<compile_context>
chip_gen: v5e
topology: v5e:2x2
jax: 0.10.0
libtpu: 0.0.40
codegen_flags: <defaults>
</compile_context>

<pallas_src>
import functools

import jax
import jax.numpy as jnp
from jax.experimental import pallas as pl
from jax.experimental.pallas import tpu as pltpu


# ----------------------------------------------------------------------------
# Kernel: one invocation handles one row-block for the whole sequence.
# ----------------------------------------------------------------------------
def _beenet_kernel(x_ref, w1_ref, b1_ref, w_ih_ref, w_hh_ref, bg_ref,
                   wq_ref, bq_ref, h0_ref, q_ref, h_scratch):
    T, bn, F = x_ref.shape
    H = h0_ref.shape[-1]
    A = q_ref.shape[-1]

    # ---- hoisted linear1 + ReLU for all timesteps in one MXU matmul ---------
    # (leading-dim merge (T, bn, F) -> (T*bn, F) is sublane-aligned: bn % 8 == 0)
    x_all = x_ref[...].reshape(T * bn, F)
    eyes = jnp.dot(x_all, w1_ref[...],
                   preferred_element_type=jnp.float32) + b1_ref[...]
    eyes = jnp.maximum(eyes, 0.0)                                    # (T*bn, H)

    # ---- hoisted input->gate contribution (off the serial critical path) ----
    xg_all = jnp.dot(eyes, w_ih_ref[...],
                     preferred_element_type=jnp.float32) + bg_ref[...]  # (T*bn, 4H)

    w_hh = w_hh_ref[...]                                             # (H, 4H)
    h = h0_ref[...]                                                  # (bn, H)
    c = jnp.zeros((bn, H), jnp.float32)

    # ---- LSTMCell recurrence, fully unrolled (T is small & static) ----------
    # Only a (bn, H) @ (H, 4H) matmul + elementwise work per step remains on
    # the serial chain.
    for t in range(T):
        gates = xg_all[t * bn:(t + 1) * bn, :] + jnp.dot(
            h, w_hh, preferred_element_type=jnp.float32)             # (bn, 4H)
        sig = jax.nn.sigmoid(gates)      # whole-tile EUP pass
        tnh = jnp.tanh(gates)            # whole-tile EUP pass
        i_g = sig[:, 0 * H:1 * H]
        f_g = sig[:, 1 * H:2 * H]
        g_g = tnh[:, 2 * H:3 * H]
        o_g = sig[:, 3 * H:4 * H]
        c = f_g * c + i_g * g_g
        h = o_g * jnp.tanh(c)
        h_scratch[t * bn:(t + 1) * bn, :] = h                        # VMEM scratch

    # ---- batched Q head (value folded into advantage), single store ---------
    q = jnp.dot(h_scratch[...], wq_ref[...],
                preferred_element_type=jnp.float32) + bq_ref[...]    # (T*bn, A)
    q_ref[...] = q.reshape(T, bn, A).astype(q_ref.dtype)


# ----------------------------------------------------------------------------
# Wrapper
# ----------------------------------------------------------------------------
@functools.partial(jax.jit, static_argnames=("mini_batch", "block_rows"))
def beenet_nocom_forward(states, comm_mask, params, mini_batch=1,
                         block_rows=None):
    """Pallas implementation of BeeNet_NoCom.forward.

    states:     (T, N, F) float32, N = n_agents * mini_batch
    comm_mask:  unused by the NoCom variant (kept for signature parity)
    block_rows: rows per grid block (None = all rows in one block).  Rows are
                independent through the recurrence, so blocks can be sharded
                across TensorCores ("parallel" grid axis; 2 TCs on v7x).
    returns:    (T, N, A) float32
    """
    del comm_mask  # constructed but never consumed by the NoCom forward
    T, N, F = states.shape
    H = params["w_hh"].shape[0]
    A = params["w_adv"].shape[1]

    # Initial hidden state: h_0 tiled over the mini batch; c starts at zero
    # (initialized inside the kernel).
    h0 = jnp.tile(params["h_0"], (mini_batch, 1))                    # (N, H)
    assert h0.shape == (N, H)

    bn = N if block_rows is None else int(block_rows)
    # Sublane alignment: either one full-row block, or 8-aligned blocks.
    assert bn == N or (N % bn == 0 and bn % 8 == 0), (N, bn)
    n_blocks = N // bn

    # One-time weight fusions (trivially cheap, outside the kernel):
    #   gates: eyes @ w_ih + (b_ih + b_hh)  [+ h @ w_hh inside the loop]
    #   q head: h @ (w_adv + w_val) + (b_adv + b_val)   (exact: val + adv,
    #   no mean subtraction in the module)
    b_gates = params["b_ih"] + params["b_hh"]                        # (1, 4H)
    w_q = params["w_adv"] + params["w_val"]                          # (H, A)
    b_q = params["b_adv"] + params["b_val"]                          # (1, A)

    vmem_full = pl.BlockSpec(memory_space=pltpu.MemorySpace.VMEM)

    return pl.pallas_call(
        _beenet_kernel,
        out_shape=jax.ShapeDtypeStruct((T, N, A), jnp.float32),
        grid=(n_blocks,),
        in_specs=[
            pl.BlockSpec((T, bn, F), lambda j: (0, j, 0)),   # states (row block)
            vmem_full,                                       # w1
            vmem_full,                                       # b1
            vmem_full,                                       # w_ih
            vmem_full,                                       # w_hh
            vmem_full,                                       # b_ih + b_hh
            vmem_full,                                       # w_adv + w_val
            vmem_full,                                       # b_adv + b_val
            pl.BlockSpec((bn, H), lambda j: (j, 0)),         # h0 (row block)
        ],
        out_specs=pl.BlockSpec((T, bn, A), lambda j: (0, j, 0)),
        scratch_shapes=[pltpu.VMEM((T * bn, H), jnp.float32)],
        compiler_params=pltpu.CompilerParams(
            dimension_semantics=("parallel",)),
    )(states, params["w1"], params["b1"], params["w_ih"], params["w_hh"],
      b_gates, w_q, b_q, h0)


# ----------------------------------------------------------------------------
# Deterministic parameter construction (synthetic weights, no checkpoints)
# ----------------------------------------------------------------------------
def make_params(key, inputdim, hidden_dim, action_space):
    n_agents = inputdim[0]
    F = inputdim[1] * inputdim[2] * 3 + 1
    H = hidden_dim * 2
    ks = jax.random.split(key, 11)
    s = 0.1
    return {
        # linear1: stored transposed relative to torch (in_features, out_features)
        "w1":    s * jax.random.normal(ks[0], (F, H), jnp.float32),
        "b1":    s * jax.random.normal(ks[1], (1, H), jnp.float32),
        # LSTMCell weights, gate order (i, f, g, o), stored transposed: (in, 4H)
        "w_ih":  s * jax.random.normal(ks[2], (H, 4 * H), jnp.float32),
        "b_ih":  s * jax.random.normal(ks[3], (1, 4 * H), jnp.float32),
        "w_hh":  s * jax.random.normal(ks[4], (H, 4 * H), jnp.float32),
        "b_hh":  s * jax.random.normal(ks[5], (1, 4 * H), jnp.float32),
        # heads
        "w_adv": s * jax.random.normal(ks[6], (H, action_space), jnp.float32),
        "b_adv": s * jax.random.normal(ks[7], (1, action_space), jnp.float32),
        "w_val": s * jax.random.normal(ks[8], (H, 1), jnp.float32),
        "b_val": s * jax.random.normal(ks[9], (1, 1), jnp.float32),
        # learned initial hidden state h_0: (n_agents, H)
        "h_0":   jax.random.normal(ks[10], (n_agents, H), jnp.float32),
    }


# ----------------------------------------------------------------------------
# Pure-JAX f32-highest reference (mirrors the PyTorch forward)
# ----------------------------------------------------------------------------
def beenet_nocom_reference(states, params, mini_batch=1):
    T, N, F = states.shape
    H = params["w_hh"].shape[0]
    hp = jax.lax.Precision.HIGHEST
    eyes = jax.nn.relu(jnp.dot(states, params["w1"], precision=hp) + params["b1"])
    h = jnp.tile(params["h_0"], (mini_batch, 1))
    c = jnp.zeros((N, H), jnp.float32)
    qs = []
    for l in range(T):
        gates = (jnp.dot(eyes[l], params["w_ih"], precision=hp) + params["b_ih"]
                 + jnp.dot(h, params["w_hh"], precision=hp) + params["b_hh"])
        i_g = jax.nn.sigmoid(gates[:, 0 * H:1 * H])
        f_g = jax.nn.sigmoid(gates[:, 1 * H:2 * H])
        g_g = jnp.tanh(gates[:, 2 * H:3 * H])
        o_g = jax.nn.sigmoid(gates[:, 3 * H:4 * H])
        c = f_g * c + i_g * g_g
        h = o_g * jnp.tanh(c)
        q = (jnp.dot(h, params["w_val"], precision=hp) + params["b_val"]) + \
            (jnp.dot(h, params["w_adv"], precision=hp) + params["b_adv"])
        qs.append(q)
    return jnp.stack(qs)


# ----------------------------------------------------------------------------
if __name__ == "__main__":
    # Small shapes consistent with the module's forward:
    #   inputdim = (n_agents, H_img, W_img) = (8, 4, 4)  ->  F = 4*4*3+1 = 49
    #   hidden_dim = 16 -> actual hidden H = 32;  action_space = 4;  T = 6
    #   mini_batch = 2  -> N = 16 rows (demonstrates wrapper-level row batching)
    inputdim = (8, 4, 4)
    hidden_dim = 16
    action_space = 4
    T = 6
    mini_batch = 2
    n_agents = inputdim[0]
    F = inputdim[1] * inputdim[2] * 3 + 1
    N = n_agents * mini_batch

    key = jax.random.PRNGKey(0)
    k_params, k_states, k_mask = jax.random.split(key, 3)

    params = make_params(k_params, inputdim, hidden_dim, action_space)
    states = jax.random.normal(k_states, (T, N, F), jnp.float32)
    # comm_mask is constructed (as in the torch API) but unused by the NoCom path.
    comm_mask = (jax.random.uniform(k_mask, (T, N, N)) > 0.5).astype(jnp.float32)

    # Single-block call (grid = 1).
    q1 = jax.block_until_ready(
        beenet_nocom_forward(states, comm_mask, params, mini_batch=mini_batch))
    # Row-blocked call (grid = 2, "parallel"): shards rows across TCs on v7x.
    q2 = jax.block_until_ready(
        beenet_nocom_forward(states, comm_mask, params, mini_batch=mini_batch,
                             block_rows=8))

    q_ref = jax.block_until_ready(
        beenet_nocom_reference(states, params, mini_batch=mini_batch))

    assert q1.shape == (T, N, action_space)
    assert q2.shape == (T, N, action_space)
    err1 = float(jnp.max(jnp.abs(q1 - q_ref)))
    err2 = float(jnp.max(jnp.abs(q2 - q_ref)))
    # Kernel matmuls run at native MXU precision (bf16 inputs, f32 accumulate);
    # the reference is f32-highest, so allow a correspondingly relaxed tolerance.
    assert err1 < 1e-2, f"max abs err (grid=1) {err1}"
    assert err2 < 1e-2, f"max abs err (grid=2) {err2}"

    print("KERNEL_OK")
</pallas_src>

<mosaic_0001>
module attributes {stable_mosaic.version = 11 : i64} {
  func.func @_beenet_kernel(%arg0: i32, %arg1: memref<6x16x49xf32, #tpu.memory_space<vmem>>, %arg2: memref<49x32xf32, #tpu.memory_space<vmem>>, %arg3: memref<1x32xf32, #tpu.memory_space<vmem>>, %arg4: memref<32x128xf32, #tpu.memory_space<vmem>>, %arg5: memref<32x128xf32, #tpu.memory_space<vmem>>, %arg6: memref<1x128xf32, #tpu.memory_space<vmem>>, %arg7: memref<32x4xf32, #tpu.memory_space<vmem>>, %arg8: memref<1x4xf32, #tpu.memory_space<vmem>>, %arg9: memref<16x32xf32, #tpu.memory_space<vmem>>, %arg10: memref<6x16x4xf32, #tpu.memory_space<vmem>>, %arg11: memref<96x32xf32, #tpu.memory_space<vmem>>) attributes {dimension_semantics = [#tpu.dimension_semantics<parallel>], iteration_bounds = array<i64: 1>, scalar_prefetch = 0 : i64, scratch_operands = 1 : i64, tpu.core_type = #tpu.core_type<tc>, window_params = [{transform_indices = @transform_0, window_bounds = array<i64: 6, 16, 49>}, {pipeline_mode = #tpu.pipeline_mode<synchronous>, transform_indices = @transform_1, window_bounds = array<i64: 49, 32>}, {pipeline_mode = #tpu.pipeline_mode<synchronous>, transform_indices = @transform_2, window_bounds = array<i64: 1, 32>}, {pipeline_mode = #tpu.pipeline_mode<synchronous>, transform_indices = @transform_3, window_bounds = array<i64: 32, 128>}, {pipeline_mode = #tpu.pipeline_mode<synchronous>, transform_indices = @transform_4, window_bounds = array<i64: 32, 128>}, {pipeline_mode = #tpu.pipeline_mode<synchronous>, transform_indices = @transform_5, window_bounds = array<i64: 1, 128>}, {pipeline_mode = #tpu.pipeline_mode<synchronous>, transform_indices = @transform_6, window_bounds = array<i64: 32, 4>}, {pipeline_mode = #tpu.pipeline_mode<synchronous>, transform_indices = @transform_7, window_bounds = array<i64: 1, 4>}, {transform_indices = @transform_8, window_bounds = array<i64: 16, 32>}, {transform_indices = @transform_9, window_bounds = array<i64: 6, 16, 4>}]} {
    %c0 = arith.constant 0 : index
    %c0_0 = arith.constant 0 : index
    %c0_1 = arith.constant 0 : index
    %0 = vector.load %arg1[%c0, %c0_0, %c0_1] : memref<6x16x49xf32, #tpu.memory_space<vmem>>, vector<6x16x49xf32>
    %1 = vector.shape_cast %0 : vector<6x16x49xf32> to vector<96x49xf32>
    %c0_2 = arith.constant 0 : index
    %c0_3 = arith.constant 0 : index
    %2 = vector.load %arg2[%c0_2, %c0_3] : memref<49x32xf32, #tpu.memory_space<vmem>>, vector<49x32xf32>
    %cst = arith.constant dense<0.000000e+00> : vector<96x32xf32>
    %3 = tpu.matmul %1, %2, %cst {dimension_numbers = #tpu.dot_dimension_numbers<[1], [0], [0], [1], [0, 0, 1, 1], [], []>} : vector<96x49xf32>, vector<49x32xf32>, vector<96x32xf32> -> vector<96x32xf32>
    %c0_4 = arith.constant 0 : index
    %c0_5 = arith.constant 0 : index
    %4 = vector.load %arg3[%c0_4, %c0_5] : memref<1x32xf32, #tpu.memory_space<vmem>>, vector<1x32xf32>
    %5 = vector.broadcast %4 : vector<1x32xf32> to vector<96x32xf32>
    %6 = arith.addf %3, %5 : vector<96x32xf32>
    %cst_6 = arith.constant 0.000000e+00 : f32
    %7 = vector.broadcast %cst_6 : f32 to vector<96x32xf32>
    %8 = arith.maximumf %6, %7 : vector<96x32xf32>
    %c0_7 = arith.constant 0 : index
    %c0_8 = arith.constant 0 : index
    %9 = vector.load %arg4[%c0_7, %c0_8] : memref<32x128xf32, #tpu.memory_space<vmem>>, vector<32x128xf32>
    %cst_9 = arith.constant dense<0.000000e+00> : vector<96x128xf32>
    %10 = tpu.matmul %8, %9, %cst_9 {dimension_numbers = #tpu.dot_dimension_numbers<[1], [0], [0], [1], [0, 0, 1, 1], [], []>} : vector<96x32xf32>, vector<32x128xf32>, vector<96x128xf32> -> vector<96x128xf32>
    %c0_10 = arith.constant 0 : index
    %c0_11 = arith.constant 0 : index
    %11 = vector.load %arg6[%c0_10, %c0_11] : memref<1x128xf32, #tpu.memory_space<vmem>>, vector<1x128xf32>
    %12 = vector.broadcast %11 : vector<1x128xf32> to vector<96x128xf32>
    %13 = arith.addf %10, %12 : vector<96x128xf32>
    %c0_12 = arith.constant 0 : index
    %c0_13 = arith.constant 0 : index
    %14 = vector.load %arg5[%c0_12, %c0_13] : memref<32x128xf32, #tpu.memory_space<vmem>>, vector<32x128xf32>
    %c0_14 = arith.constant 0 : index
    %c0_15 = arith.constant 0 : index
    %15 = vector.load %arg9[%c0_14, %c0_15] : memref<16x32xf32, #tpu.memory_space<vmem>>, vector<16x32xf32>
    %cst_16 = arith.constant 0.000000e+00 : f32
    %16 = vector.broadcast %cst_16 : f32 to vector<16x32xf32>
    %17 = vector.extract_strided_slice %13 {offsets = [0, 0], sizes = [16, 128], strides = [1, 1]} : vector<96x128xf32> to vector<16x128xf32>
    %cst_17 = arith.constant dense<0.000000e+00> : vector<16x128xf32>
    %18 = tpu.matmul %15, %14, %cst_17 {dimension_numbers = #tpu.dot_dimension_numbers<[1], [0], [0], [1], [0, 0, 1, 1], [], []>} : vector<16x32xf32>, vector<32x128xf32>, vector<16x128xf32> -> vector<16x128xf32>
    %19 = arith.addf %17, %18 : vector<16x128xf32>
    %20 = arith.negf %19 : vector<16x128xf32>
    %21 = math.exp %20 : vector<16x128xf32>
    %cst_18 = arith.constant 1.000000e+00 : f32
    %22 = vector.broadcast %cst_18 : f32 to vector<16x128xf32>
    %23 = arith.addf %22, %21 : vector<16x128xf32>
    %24 = arith.divf %22, %23 : vector<16x128xf32>
    %25 = math.tanh %19 : vector<16x128xf32>
    %26 = vector.extract_strided_slice %24 {offsets = [0, 0], sizes = [16, 32], strides = [1, 1]} : vector<16x128xf32> to vector<16x32xf32>
    %27 = vector.extract_strided_slice %24 {offsets = [0, 32], sizes = [16, 32], strides = [1, 1]} : vector<16x128xf32> to vector<16x32xf32>
    %28 = vector.extract_strided_slice %25 {offsets = [0, 64], sizes = [16, 32], strides = [1, 1]} : vector<16x128xf32> to vector<16x32xf32>
    %29 = vector.extract_strided_slice %24 {offsets = [0, 96], sizes = [16, 32], strides = [1, 1]} : vector<16x128xf32> to vector<16x32xf32>
    %30 = arith.mulf %27, %16 : vector<16x32xf32>
    %31 = arith.mulf %26, %28 : vector<16x32xf32>
    %32 = arith.addf %30, %31 : vector<16x32xf32>
    %33 = math.tanh %32 : vector<16x32xf32>
    %34 = arith.mulf %29, %33 : vector<16x32xf32>
    %c0_19 = arith.constant 0 : index
    %c0_20 = arith.constant 0 : index
    %35 = vector.load %arg11[%c0_19, %c0_20] : memref<96x32xf32, #tpu.memory_space<vmem>>, vector<16x32xf32>
    tpu.vector_store %arg11[%c0_19, %c0_20], %34 {strides = array<i32>} : memref<96x32xf32, #tpu.memory_space<vmem>>, vector<16x32xf32>,
    %36 = vector.extract_strided_slice %13 {offsets = [16, 0], sizes = [16, 128], strides = [1, 1]} : vector<96x128xf32> to vector<16x128xf32>
    %cst_21 = arith.constant dense<0.000000e+00> : vector<16x128xf32>
    %37 = tpu.matmul %34, %14, %cst_21 {dimension_numbers = #tpu.dot_dimension_numbers<[1], [0], [0], [1], [0, 0, 1, 1], [], []>} : vector<16x32xf32>, vector<32x128xf32>, vector<16x128xf32> -> vector<16x128xf32>
    %38 = arith.addf %36, %37 : vector<16x128xf32>
    %39 = arith.negf %38 : vector<16x128xf32>
    %40 = math.exp %39 : vector<16x128xf32>
    %cst_22 = arith.constant 1.000000e+00 : f32
    %41 = vector.broadcast %cst_22 : f32 to vector<16x128xf32>
    %42 = arith.addf %41, %40 : vector<16x128xf32>
    %43 = arith.divf %41, %42 : vector<16x128xf32>
    %44 = math.tanh %38 : vector<16x128xf32>
    %45 = vector.extract_strided_slice %43 {offsets = [0, 0], sizes = [16, 32], strides = [1, 1]} : vector<16x128xf32> to vector<16x32xf32>
    %46 = vector.extract_strided_slice %43 {offsets = [0, 32], sizes = [16, 32], strides = [1, 1]} : vector<16x128xf32> to vector<16x32xf32>
    %47 = vector.extract_strided_slice %44 {offsets = [0, 64], sizes = [16, 32], strides = [1, 1]} : vector<16x128xf32> to vector<16x32xf32>
    %48 = vector.extract_strided_slice %43 {offsets = [0, 96], sizes = [16, 32], strides = [1, 1]} : vector<16x128xf32> to vector<16x32xf32>
    %49 = arith.mulf %46, %32 : vector<16x32xf32>
    %50 = arith.mulf %45, %47 : vector<16x32xf32>
    %51 = arith.addf %49, %50 : vector<16x32xf32>
    %52 = math.tanh %51 : vector<16x32xf32>
    %53 = arith.mulf %48, %52 : vector<16x32xf32>
    %c16 = arith.constant 16 : index
    %c0_23 = arith.constant 0 : index
    %54 = vector.load %arg11[%c16, %c0_23] : memref<96x32xf32, #tpu.memory_space<vmem>>, vector<16x32xf32>
    tpu.vector_store %arg11[%c16, %c0_23], %53 {strides = array<i32>} : memref<96x32xf32, #tpu.memory_space<vmem>>, vector<16x32xf32>,
    %55 = vector.extract_strided_slice %13 {offsets = [32, 0], sizes = [16, 128], strides = [1, 1]} : vector<96x128xf32> to vector<16x128xf32>
    %cst_24 = arith.constant dense<0.000000e+00> : vector<16x128xf32>
    %56 = tpu.matmul %53, %14, %cst_24 {dimension_numbers = #tpu.dot_dimension_numbers<[1], [0], [0], [1], [0, 0, 1, 1], [], []>} : vector<16x32xf32>, vector<32x128xf32>, vector<16x128xf32> -> vector<16x128xf32>
    %57 = arith.addf %55, %56 : vector<16x128xf32>
    %58 = arith.negf %57 : vector<16x128xf32>
    %59 = math.exp %58 : vector<16x128xf32>
    %cst_25 = arith.constant 1.000000e+00 : f32
    %60 = vector.broadcast %cst_25 : f32 to vector<16x128xf32>
    %61 = arith.addf %60, %59 : vector<16x128xf32>
    %62 = arith.divf %60, %61 : vector<16x128xf32>
    %63 = math.tanh %57 : vector<16x128xf32>
    %64 = vector.extract_strided_slice %62 {offsets = [0, 0], sizes = [16, 32], strides = [1, 1]} : vector<16x128xf32> to vector<16x32xf32>
    %65 = vector.extract_strided_slice %62 {offsets = [0, 32], sizes = [16, 32], strides = [1, 1]} : vector<16x128xf32> to vector<16x32xf32>
    %66 = vector.extract_strided_slice %63 {offsets = [0, 64], sizes = [16, 32], strides = [1, 1]} : vector<16x128xf32> to vector<16x32xf32>
    %67 = vector.extract_strided_slice %62 {offsets = [0, 96], sizes = [16, 32], strides = [1, 1]} : vector<16x128xf32> to vector<16x32xf32>
    %68 = arith.mulf %65, %51 : vector<16x32xf32>
    %69 = arith.mulf %64, %66 : vector<16x32xf32>
    %70 = arith.addf %68, %69 : vector<16x32xf32>
    %71 = math.tanh %70 : vector<16x32xf32>
    %72 = arith.mulf %67, %71 : vector<16x32xf32>
    %c32 = arith.constant 32 : index
    %c0_26 = arith.constant 0 : index
    %73 = vector.load %arg11[%c32, %c0_26] : memref<96x32xf32, #tpu.memory_space<vmem>>, vector<16x32xf32>
    tpu.vector_store %arg11[%c32, %c0_26], %72 {strides = array<i32>} : memref<96x32xf32, #tpu.memory_space<vmem>>, vector<16x32xf32>,
    %74 = vector.extract_strided_slice %13 {offsets = [48, 0], sizes = [16, 128], strides = [1, 1]} : vector<96x128xf32> to vector<16x128xf32>
    %cst_27 = arith.constant dense<0.000000e+00> : vector<16x128xf32>
    %75 = tpu.matmul %72, %14, %cst_27 {dimension_numbers = #tpu.dot_dimension_numbers<[1], [0], [0], [1], [0, 0, 1, 1], [], []>} : vector<16x32xf32>, vector<32x128xf32>, vector<16x128xf32> -> vector<16x128xf32>
    %76 = arith.addf %74, %75 : vector<16x128xf32>
    %77 = arith.negf %76 : vector<16x128xf32>
    %78 = math.exp %77 : vector<16x128xf32>
    %cst_28 = arith.constant 1.000000e+00 : f32
    %79 = vector.broadcast %cst_28 : f32 to vector<16x128xf32>
    %80 = arith.addf %79, %78 : vector<16x128xf32>
    %81 = arith.divf %79, %80 : vector<16x128xf32>
    %82 = math.tanh %76 : vector<16x128xf32>
    %83 = vector.extract_strided_slice %81 {offsets = [0, 0], sizes = [16, 32], strides = [1, 1]} : vector<16x128xf32> to vector<16x32xf32>
    %84 = vector.extract_strided_slice %81 {offsets = [0, 32], sizes = [16, 32], strides = [1, 1]} : vector<16x128xf32> to vector<16x32xf32>
    %85 = vector.extract_strided_slice %82 {offsets = [0, 64], sizes = [16, 32], strides = [1, 1]} : vector<16x128xf32> to vector<16x32xf32>
    %86 = vector.extract_strided_slice %81 {offsets = [0, 96], sizes = [16, 32], strides = [1, 1]} : vector<16x128xf32> to vector<16x32xf32>
    %87 = arith.mulf %84, %70 : vector<16x32xf32>
    %88 = arith.mulf %83, %85 : vector<16x32xf32>
    %89 = arith.addf %87, %88 : vector<16x32xf32>
    %90 = math.tanh %89 : vector<16x32xf32>
    %91 = arith.mulf %86, %90 : vector<16x32xf32>
    %c48 = arith.constant 48 : index
    %c0_29 = arith.constant 0 : index
    %92 = vector.load %arg11[%c48, %c0_29] : memref<96x32xf32, #tpu.memory_space<vmem>>, vector<16x32xf32>
    tpu.vector_store %arg11[%c48, %c0_29], %91 {strides = array<i32>} : memref<96x32xf32, #tpu.memory_space<vmem>>, vector<16x32xf32>,
    %93 = vector.extract_strided_slice %13 {offsets = [64, 0], sizes = [16, 128], strides = [1, 1]} : vector<96x128xf32> to vector<16x128xf32>
    %cst_30 = arith.constant dense<0.000000e+00> : vector<16x128xf32>
    %94 = tpu.matmul %91, %14, %cst_30 {dimension_numbers = #tpu.dot_dimension_numbers<[1], [0], [0], [1], [0, 0, 1, 1], [], []>} : vector<16x32xf32>, vector<32x128xf32>, vector<16x128xf32> -> vector<16x128xf32>
    %95 = arith.addf %93, %94 : vector<16x128xf32>
    %96 = arith.negf %95 : vector<16x128xf32>
    %97 = math.exp %96 : vector<16x128xf32>
    %cst_31 = arith.constant 1.000000e+00 : f32
    %98 = vector.broadcast %cst_31 : f32 to vector<16x128xf32>
    %99 = arith.addf %98, %97 : vector<16x128xf32>
    %100 = arith.divf %98, %99 : vector<16x128xf32>
    %101 = math.tanh %95 : vector<16x128xf32>
    %102 = vector.extract_strided_slice %100 {offsets = [0, 0], sizes = [16, 32], strides = [1, 1]} : vector<16x128xf32> to vector<16x32xf32>
    %103 = vector.extract_strided_slice %100 {offsets = [0, 32], sizes = [16, 32], strides = [1, 1]} : vector<16x128xf32> to vector<16x32xf32>
    %104 = vector.extract_strided_slice %101 {offsets = [0, 64], sizes = [16, 32], strides = [1, 1]} : vector<16x128xf32> to vector<16x32xf32>
    %105 = vector.extract_strided_slice %100 {offsets = [0, 96], sizes = [16, 32], strides = [1, 1]} : vector<16x128xf32> to vector<16x32xf32>
    %106 = arith.mulf %103, %89 : vector<16x32xf32>
    %107 = arith.mulf %102, %104 : vector<16x32xf32>
    %108 = arith.addf %106, %107 : vector<16x32xf32>
    %109 = math.tanh %108 : vector<16x32xf32>
    %110 = arith.mulf %105, %109 : vector<16x32xf32>
    %c64 = arith.constant 64 : index
    %c0_32 = arith.constant 0 : index
    %111 = vector.load %arg11[%c64, %c0_32] : memref<96x32xf32, #tpu.memory_space<vmem>>, vector<16x32xf32>
    tpu.vector_store %arg11[%c64, %c0_32], %110 {strides = array<i32>} : memref<96x32xf32, #tpu.memory_space<vmem>>, vector<16x32xf32>,
    %112 = vector.extract_strided_slice %13 {offsets = [80, 0], sizes = [16, 128], strides = [1, 1]} : vector<96x128xf32> to vector<16x128xf32>
    %cst_33 = arith.constant dense<0.000000e+00> : vector<16x128xf32>
    %113 = tpu.matmul %110, %14, %cst_33 {dimension_numbers = #tpu.dot_dimension_numbers<[1], [0], [0], [1], [0, 0, 1, 1], [], []>} : vector<16x32xf32>, vector<32x128xf32>, vector<16x128xf32> -> vector<16x128xf32>
    %114 = arith.addf %112, %113 : vector<16x128xf32>
    %115 = arith.negf %114 : vector<16x128xf32>
    %116 = math.exp %115 : vector<16x128xf32>
    %cst_34 = arith.constant 1.000000e+00 : f32
    %117 = vector.broadcast %cst_34 : f32 to vector<16x128xf32>
    %118 = arith.addf %117, %116 : vector<16x128xf32>
    %119 = arith.divf %117, %118 : vector<16x128xf32>
    %120 = math.tanh %114 : vector<16x128xf32>
    %121 = vector.extract_strided_slice %119 {offsets = [0, 0], sizes = [16, 32], strides = [1, 1]} : vector<16x128xf32> to vector<16x32xf32>
    %122 = vector.extract_strided_slice %119 {offsets = [0, 32], sizes = [16, 32], strides = [1, 1]} : vector<16x128xf32> to vector<16x32xf32>
    %123 = vector.extract_strided_slice %120 {offsets = [0, 64], sizes = [16, 32], strides = [1, 1]} : vector<16x128xf32> to vector<16x32xf32>
    %124 = vector.extract_strided_slice %119 {offsets = [0, 96], sizes = [16, 32], strides = [1, 1]} : vector<16x128xf32> to vector<16x32xf32>
    %125 = arith.mulf %122, %108 : vector<16x32xf32>
    %126 = arith.mulf %121, %123 : vector<16x32xf32>
    %127 = arith.addf %125, %126 : vector<16x32xf32>
    %128 = math.tanh %127 : vector<16x32xf32>
    %129 = arith.mulf %124, %128 : vector<16x32xf32>
    %c80 = arith.constant 80 : index
    %c0_35 = arith.constant 0 : index
    %130 = vector.load %arg11[%c80, %c0_35] : memref<96x32xf32, #tpu.memory_space<vmem>>, vector<16x32xf32>
    tpu.vector_store %arg11[%c80, %c0_35], %129 {strides = array<i32>} : memref<96x32xf32, #tpu.memory_space<vmem>>, vector<16x32xf32>,
    %c0_36 = arith.constant 0 : index
    %c0_37 = arith.constant 0 : index
    %131 = vector.load %arg11[%c0_36, %c0_37] : memref<96x32xf32, #tpu.memory_space<vmem>>, vector<96x32xf32>
    %c0_38 = arith.constant 0 : index
    %c0_39 = arith.constant 0 : index
    %132 = vector.load %arg7[%c0_38, %c0_39] : memref<32x4xf32, #tpu.memory_space<vmem>>, vector<32x4xf32>
    %cst_40 = arith.constant dense<0.000000e+00> : vector<96x4xf32>
    %133 = tpu.matmul %131, %132, %cst_40 {dimension_numbers = #tpu.dot_dimension_numbers<[1], [0], [0], [1], [0, 0, 1, 1], [], []>} : vector<96x32xf32>, vector<32x4xf32>, vector<96x4xf32> -> vector<96x4xf32>
    %c0_41 = arith.constant 0 : index
    %c0_42 = arith.constant 0 : index
    %134 = vector.load %arg8[%c0_41, %c0_42] : memref<1x4xf32, #tpu.memory_space<vmem>>, vector<1x4xf32>
    %135 = vector.broadcast %134 : vector<1x4xf32> to vector<96x4xf32>
    %136 = arith.addf %133, %135 : vector<96x4xf32>
    %137 = vector.shape_cast %136 : vector<96x4xf32> to vector<6x16x4xf32>
    %c0_43 = arith.constant 0 : index
    %c0_44 = arith.constant 0 : index
    %c0_45 = arith.constant 0 : index
    %138 = vector.load %arg10[%c0_43, %c0_44, %c0_45] : memref<6x16x4xf32, #tpu.memory_space<vmem>>, vector<6x16x4xf32>
    tpu.vector_store %arg10[%c0_43, %c0_44, %c0_45], %137 {strides = array<i32>} : memref<6x16x4xf32, #tpu.memory_space<vmem>>, vector<6x16x4xf32>,
    return
  }
  func.func @transform_0(%arg0: i32) -> (i32, i32, i32) {
    %c0_i32 = arith.constant 0 : i32
    %c0_i32_0 = arith.constant 0 : i32
    %c0_i32_1 = arith.constant 0 : i32
    return %c0_i32, %arg0, %c0_i32_0 : i32, i32, i32
  }
  func.func @transform_1(%arg0: i32) -> (i32, i32) {
    %c0_i32 = arith.constant 0 : i32
    %c0_i32_0 = arith.constant 0 : i32
    %c0_i32_1 = arith.constant 0 : i32
    return %c0_i32, %c0_i32_0 : i32, i32
  }
  func.func @transform_2(%arg0: i32) -> (i32, i32) {
    %c0_i32 = arith.constant 0 : i32
    %c0_i32_0 = arith.constant 0 : i32
    %c0_i32_1 = arith.constant 0 : i32
    return %c0_i32, %c0_i32_0 : i32, i32
  }
  func.func @transform_3(%arg0: i32) -> (i32, i32) {
    %c0_i32 = arith.constant 0 : i32
    %c0_i32_0 = arith.constant 0 : i32
    %c0_i32_1 = arith.constant 0 : i32
    return %c0_i32, %c0_i32_0 : i32, i32
  }
  func.func @transform_4(%arg0: i32) -> (i32, i32) {
    %c0_i32 = arith.constant 0 : i32
    %c0_i32_0 = arith.constant 0 : i32
    %c0_i32_1 = arith.constant 0 : i32
    return %c0_i32, %c0_i32_0 : i32, i32
  }
  func.func @transform_5(%arg0: i32) -> (i32, i32) {
    %c0_i32 = arith.constant 0 : i32
    %c0_i32_0 = arith.constant 0 : i32
    %c0_i32_1 = arith.constant 0 : i32
    return %c0_i32, %c0_i32_0 : i32, i32
  }
  func.func @transform_6(%arg0: i32) -> (i32, i32) {
    %c0_i32 = arith.constant 0 : i32
    %c0_i32_0 = arith.constant 0 : i32
    %c0_i32_1 = arith.constant 0 : i32
    return %c0_i32, %c0_i32_0 : i32, i32
  }
  func.func @transform_7(%arg0: i32) -> (i32, i32) {
    %c0_i32 = arith.constant 0 : i32
    %c0_i32_0 = arith.constant 0 : i32
    %c0_i32_1 = arith.constant 0 : i32
    return %c0_i32, %c0_i32_0 : i32, i32
  }
  func.func @transform_8(%arg0: i32) -> (i32, i32) {
    %c0_i32 = arith.constant 0 : i32
    %c0_i32_0 = arith.constant 0 : i32
    return %arg0, %c0_i32 : i32, i32
  }
  func.func @transform_9(%arg0: i32) -> (i32, i32, i32) {
    %c0_i32 = arith.constant 0 : i32
    %c0_i32_0 = arith.constant 0 : i32
    %c0_i32_1 = arith.constant 0 : i32
    return %c0_i32, %arg0, %c0_i32_0 : i32, i32, i32
  }
}

</mosaic_0001>

<bundles_post_ra>
// kernel: beenet_nocom_forward.1
= control target key start
LH: loop header
LB: loop body
LE: loop exit
PB: predicated region body
PF: predicated region fallthrough
CT: control target
= control target key end

     0   :  { %vm92_vm0 = vcmask 1040384   ;;  %vm55_vm1 = vcmask 400384   ;;  %vm169_vm2 = vcmask 261120   ;;  %s1243_s26 = smov 64   ;;  %s1244_s27 = smov 32   ;;  %s1679_s1 = inlined_call_operand.vmem [shape: f32[49,32], index: 1, kind: input, shape index: {}]   ;;  %s1680_s4 = inlined_call_operand.vmem [shape: f32[32,128], index: 4, kind: input, shape index: {}]   ;;  %s1681_s3 = inlined_call_operand.vmem [shape: f32[32,128], index: 3, kind: input, shape index: {}]   ;;  %s1682_s2 = inlined_call_operand.vmem [shape: f32[1,32], index: 2, kind: input, shape index: {}]   ;;  %s1683_s0 = inlined_call_operand.vmem [shape: f32[6,16,49], index: 0, kind: input, shape index: {}]   ;;  %s1684_s5 = inlined_call_operand.vmem [shape: f32[1,128], index: 5, kind: input, shape index: {}]   ;;  %s1685_s8 = inlined_call_operand.vmem [shape: f32[16,32], index: 8, kind: input, shape index: {}]   ;;  %s1686_s6 = inlined_call_operand.vmem [shape: f32[32,4], index: 6, kind: input, shape index: {}]   ;;  %s1687_s7 = inlined_call_operand.vmem [shape: f32[1,4], index: 7, kind: input, shape index: {}]   ;;  %s1688_s9 = inlined_call_operand.vmem [shape: f32[6,16,4], index: 9, kind: output, shape index: {}]  }
   0x1   :  { %v50_v0 = vld [vmem:[%s1679_s1 + $0x30] sm:$0x1]  ;;  %v49_v1 = vld [vmem:[%s1679_s1 + $0x28] sm:$0xff]  ;;  %v48_v2 = vld [vmem:[%s1679_s1 + $0x20] sm:$0xff] }
   0x2   :  { %1071 = vmatpush.msk.msra.mxu0 %vm92_vm0, %v50_v0  ;;  %v1307_v3 = vld [vmem:[%s1680_s4 + $0x18] sm:$0xff]  ;;  %v1312_v4 = vld [vmem:[%s1680_s4 + $0x10] sm:$0xff]  ;;  %v1324_v7 = vld [vmem:[%s1680_s4 + $0x8] sm:$0xff] }
   0x3   :  { %v164_v5 = vld [vmem:[%s1681_s3 + $0x18] sm:$0xff]  ;;  %283 = vmatpush.msra.mxu2 %v1307_v3  ;;  %1132 = vmatpush.msra.mxu3 %v1307_v3  ;;  %v46_v8 = vld [vmem:[%s1679_s1 + $0x10] sm:$0xff]  ;;  %v45_v9 = vld [vmem:[%s1679_s1 + $0x8] sm:$0xff] }
   0x4   :  { %106 = vmatpush.msra.mxu0 %v49_v1  ;;  %v47_v6 = vld [vmem:[%s1679_s1 + $0x18] sm:$0xff]  ;;  %218 = vmatpush.msra.mxu1 %v164_v5  ;;  %v44_v10 = vld [vmem:[%s1679_s1] sm:$0xff]  ;;  %v33_v12 = vld [vmem:[%s1683_s0 + $0x8] sm:$0xff] }
   0x5   :  { %284 = vmatpush.msra.mxu2 %v1312_v4  ;;  %1133 = vmatpush.msra.mxu3 %v1312_v4  ;;  %v32_v11 = vld [vmem:[%s1683_s0] sm:$0xff]  ;;  %v163_v13 = vld [vmem:[%s1681_s3 + $0x10] sm:$0xff]  ;;  %v162_v16 = vld [vmem:[%s1681_s3 + $0x8] sm:$0xff] }
   0x6   :  { %107 = vmatpush.msra.mxu0 %v48_v2  ;;  %v1354_v14 = vld [vmem:[%s1680_s4] sm:$0xff]  ;;  %219 = vmatpush.msra.mxu1 %v163_v13  ;;  %v264_v18 = vld [vmem:[%s1685_s8 + $0x8] sm:$0xff]  ;;  %v34_v5 = vld [vmem:[%s1683_s0 + $0x10] sm:$0xff] }
   0x7   :  { %285 = vmatpush.msra.mxu2 %v1324_v7  ;;  %1134 = vmatpush.msra.mxu3 %v1324_v7  ;;  %v263_v15 = vld [vmem:[%s1685_s8] sm:$0xff] }
   0x8   :  { %108 = vmatpush.msra.mxu0 %v47_v6  ;;  %220 = vmatpush.msra.mxu1 %v162_v16  ;;  %v161_v17 = vld [vmem:[%s1681_s3] sm:$0xff]  ;;  %v35_v6 = vld [vmem:[%s1683_s0 + $0x18] sm:$0xff] }
   0x9   :  { %286 = vmatpush.msra.mxu2 %v1354_v14  ;;  %1135 = vmatpush.msra.mxu3 %v1354_v14  ;;  %v1391_v19 = vld [vmem:[%s1682_s2] ss:$0 sm:$0xff] }
   0xa   :  { %109 = vmatpush.msra.mxu0 %v46_v8  ;;  %1096 = vmatmul.msk.f32.vlgmr.msra.gmra.mxu2 %vm169_vm2, %v263_v15  ;;  %v1400_v26 = vld [vmem:[%s1684_s5] ss:$0 sm:$0xff] }
   0xb   :  { %396 = vmatpush.msrb.mxu3 %v1307_v3  ;;  %509 = vmatpush.msrb.mxu2 %v1307_v3 }
   0xc   :  { %110 = vmatpush.msra.mxu0 %v45_v9  ;;  %221 = vmatpush.msra.mxu1 %v161_v17 }
   0xd   :  { %397 = vmatpush.msrb.mxu3 %v1312_v4  ;;  %510 = vmatpush.msrb.mxu2 %v1312_v4 }
   0xe   :  { %111 = vmatpush.msra.mxu0 %v44_v10  ;;  %1097 = vmatmul.msk.f32.vlgmr.msra.gmra.mxu3 %vm169_vm2, %v264_v18 }
   0xf   :  { %1072 = vmatmul.msk.f32.vlgmr.msra.gmra.mxu0 %vm55_vm1, %v32_v11  ;;  %398 = vmatpush.msrb.mxu3 %v1324_v7 }
  0x10   :  { %511 = vmatpush.msrb.mxu2 %v1324_v7 }
  0x11   :  { %399 = vmatpush.msrb.mxu3 %v1354_v14 }
  0x12   :  { %512 = vmatpush.msrb.mxu2 %v1354_v14 }
  0x13   :  { %622 = vmatpush.msra.mxu3 %v1307_v3 }
  0x14   :  { %735 = vmatpush.msra.mxu2 %v1307_v3 }
  0x15   :  { %623 = vmatpush.msra.mxu3 %v1312_v4 }
  0x16   :  { %736 = vmatpush.msra.mxu2 %v1312_v4 }
  0x17   :  { %1073 = vmatmul.msk.f32.gmra.mxu0 %vm55_vm1, %v33_v12  ;;  %624 = vmatpush.msra.mxu3 %v1324_v7 }
  0x18   :  { %737 = vmatpush.msra.mxu2 %v1324_v7 }
  0x19   :  { %625 = vmatpush.msra.mxu3 %v1354_v14 }
  0x1a   :  { %738 = vmatpush.msra.mxu2 %v1354_v14 }
  0x1f   :  { %1074 = vmatmul.msk.f32.gmra.mxu0 %vm55_vm1, %v34_v5  ;;  %v36_v5 = vld [vmem:[%s1683_s0 + $0x20] sm:$0xff] }
  0x27   :  { %1075 = vmatmul.msk.f32.gmra.mxu0 %vm55_vm1, %v35_v6  ;;  %v37_v6 = vld [vmem:[%s1683_s0 + $0x28] sm:$0xff] }
  0x2f   :  { %1076 = vmatmul.msk.f32.gmra.mxu0 %vm55_vm1, %v36_v5  ;;  %v38_v5 = vld [vmem:[%s1683_s0 + $0x30] sm:$0xff] }
  0x37   :  { %1077 = vmatmul.msk.f32.gmra.mxu0 %vm55_vm1, %v37_v6  ;;  %v39_v6 = vld [vmem:[%s1683_s0 + $0x38] sm:$0xff] }
  0x3f   :  { %1078 = vmatmul.msk.f32.gmra.mxu0 %vm55_vm1, %v38_v5 }
  0x47   :  { %1079 = vmatmul.msk.f32.gmra.mxu0 %vm55_vm1, %v39_v6 }
  0x8c   :  { %v113_v20 = vpop.f32.mrf.mxu0 }
  0x8d   :  { %v114_v21 = vadd.f32 %v1391_v19, %v113_v20  ;;  %v288_v28 = vpop.f32.mrf.mxu2 }
  0x8f   :  { %v149_v22 = vmax.f32 %v114_v21, 0.0 }
  0x91   :  { %1084 = vmatmul.msk.f32.vlgmr.msra.gmra.mxu1 %vm169_vm2, %v149_v22  ;;  %v291_v32 = vpop.f32.mrf.mxu3 }
  0x94   :  { %v116_v23 = vpop.f32.mrf.mxu0 }
  0x95   :  { %v117_v24 = vadd.f32 %v1391_v19, %v116_v23 }
  0x97   :  { %v150_v25 = vmax.f32 %v117_v24, 0.0 }
  0x99   :  { %1085 = vmatmul.msk.f32.gmra.mxu1 %vm169_vm2, %v150_v25 }
  0x9c   :  { %v119_v22 = vpop.f32.mrf.mxu0 }
  0x9d   :  { %v120_v23 = vadd.f32 %v1391_v19, %v119_v22 }
  0x9f   :  { %v151_v24 = vmax.f32 %v120_v23, 0.0 }
  0xa1   :  { %1086 = vmatmul.msk.f32.gmra.mxu1 %vm169_vm2, %v151_v24 }
  0xa4   :  { %v122_v25 = vpop.f32.mrf.mxu0 }
 0x10e   :  { %v223_v27 = vpop.f32.mrf.mxu1 }
 0x10f   :  { %v224_v29 = vadd.f32 %v1400_v26, %v223_v27  ;;  %v123_v27 = vadd.f32 %v1391_v19, %v122_v25 }
 0x111   :  { %v294_v30 = vadd.f32 %v288_v28, %v224_v29  ;;  %v152_v28 = vmax.f32 %v123_v27, 0.0 }
 0x113   :  { %1145 = vtanh.f32 %v294_v30  ;;  %v1098_v37 = vmul.f32 -1.442695, %v294_v30  ;;  %1087 = vmatmul.msk.f32.gmra.mxu1 %vm169_vm2, %v152_v28 }
 0x116   :  { %v226_v31 = vpop.f32.mrf.mxu1 }
 0x117   :  { %v227_v33 = vadd.f32 %v1400_v26, %v226_v31 }
 0x119   :  { %v1146_v34 = vpop.eup %1145  ;;  %v295_v35 = vadd.f32 %v291_v32, %v227_v33 }
 0x11a   :  { %340 = vrot.lane.b32.xlu0 %v1146_v34, %s1243_s26 }
 0x11b   :  { %1147 = vtanh.f32 %v295_v35  ;;  %v1099_v38 = vmul.f32 -1.442695, %v295_v35 }
 0x11c   :  { %1149 = vpow2.f32 %v1098_v37 }
 0x11d   :  { %1151 = vpow2.f32 %v1099_v38 }
 0x11e   :  { %v229_v31 = vpop.f32.mrf.mxu1 }
 0x11f   :  { %v230_v32 = vadd.f32 %v1400_v26, %v229_v31 }
 0x121   :  { %v1148_v36 = vpop.eup %1147 }
 0x122   :  { %342 = vrot.lane.b32.xlu0 %v1148_v36, %s1243_s26  ;;  %v1150_v39 = vpop.eup %1149 }
 0x123   :  { %v302_v40 = vadd.f32 1.0, %v1150_v39  ;;  %v1152_v41 = vpop.eup %1151 }
 0x124   :  { %v303_v42 = vadd.f32 1.0, %v1152_v41 }
 0x125   :  { %1153 = vrcp.f32 %v302_v40  ;;  %v315_v51 = vand.u32 2147483648, %v302_v40  ;;  %vm309_vm4 = vweird.f32 %v302_v40  ;;  %v313_v52 = vand.u32 2147483647, %v302_v40 }
 0x126   :  { %1155 = vrcp.f32 %v303_v42  ;;  %v330_v60 = vand.u32 2147483648, %v303_v42  ;;  %vm324_vm8 = vweird.f32 %v303_v42  ;;  %v328_v61 = vand.u32 2147483647, %v303_v42 }
 0x127   :  { %v316_v55 = vor.u32 1.1754944e-38, %v315_v51  ;;  %vm314_vm6 = vcmp.eq.f32.partialorder %v313_v52, 8.507059e+37 }
 0x128   :  { %v331_v63 = vor.u32 1.1754944e-38, %v330_v60  ;;  %vm329_vm10 = vcmp.eq.f32.partialorder %v328_v61, 8.507059e+37 }
 0x12b   :  { %v1154_v43 = vpop.eup %1153 }
 0x12c   :  { %v305_v44 = vmul.f32 %v1154_v43, %v302_v40  ;;  %v1156_v46 = vpop.eup %1155  ;;  %vm310_vm3 = vweird.f32 %v1154_v43 }
 0x12d   :  { %v320_v48 = vmul.f32 %v1156_v46, %v303_v42  ;;  %vm311_vm5 = vmor %vm309_vm4, %vm310_vm3  ;;  %vm325_vm7 = vweird.f32 %v1156_v46 }
 0x12e   :  { %v306_v45 = vsub.f32 1.0, %v305_v44  ;;  %vm326_vm9 = vmor %vm324_vm8, %vm325_vm7 }
 0x12f   :  { %v321_v50 = vsub.f32 1.0, %v320_v48 }
 0x130   :  { %v307_v47 = vmul.f32 %v1154_v43, %v306_v45 }
 0x131   :  { %v322_v54 = vmul.f32 %v1156_v46, %v321_v50 }
 0x132   :  { %v308_v49 = vadd.f32 %v1154_v43, %v307_v47 }
 0x133   :  { %v323_v59 = vadd.f32 %v1156_v46, %v322_v54 }
 0x134   :  { %v312_v53 = vsel %vm311_vm5, %v1154_v43, %v308_v49 }
 0x135   :  { %v317_v57 = vsel %vm314_vm6, %v316_v55, %v312_v53  ;;  %v327_v62 = vsel %vm326_vm9, %v1156_v46, %v323_v59 }
 0x136   :  { %v332_v0 = vsel %vm329_vm10, %v331_v63, %v327_v62  ;;  %v336_v8 = vmul.f32 0.0, %v317_v57 }
 0x137   :  { %v337_v11 = vmul.f32 0.0, %v332_v0 }
 0x18c   :  { %v341_v56 = vpop.permute.xlu0 %340 }
 0x18d   :  { %v346_v58 = vmul.f32 %v341_v56, %v317_v57 }
 0x18f   :  { %350 = vrot.lane.b32.xlu1 %v346_v58, %s1244_s27 }
 0x190   :  { %v232_v35 = vpop.f32.mrf.mxu1 }
 0x194   :  { %v343_v1 = vpop.permute.xlu0 %342 }
 0x195   :  { %v347_v2 = vmul.f32 %v343_v1, %v332_v0 }
 0x197   :  { %352 = vrot.lane.b32.xlu1 %v347_v2, %s1244_s27 }
 0x201   :  { %v351_v9 = vpop.permute.xlu1 %350 }
 0x202   :  { %v1416_v10 = vadd.f32 %v351_v9, %v336_v8 }
 0x204   :  { %1157 = vtanh.f32 %v1416_v10 }
 0x209   :  { %v353_v12 = vpop.permute.xlu1 %352 }
 0x20a   :  { %v1158_v13 = vpop.eup %1157  ;;  %v1419_v15 = vadd.f32 %v353_v12, %v337_v11 }
 0x20b   :  { %362 = vrot.lane.b32.xlu2 %v1158_v13, %s1243_s26 }
 0x20c   :  { %1159 = vtanh.f32 %v1419_v15 }
 0x212   :  { %v1160_v16 = vpop.eup %1159 }
 0x213   :  { %364 = vrot.lane.b32.xlu2 %v1160_v16, %s1243_s26 }
 0x265   :  { %v363_v17 = vpop.permute.xlu2 %362 }
 0x266   :  { %v368_v18 = vmul.f32 %v363_v17, %v317_v57 }
 0x268   :  { %372 = vrot.lane.b32.xlu0 %v368_v18, %s1244_s27 }
 0x26d   :  { %v365_v20 = vpop.permute.xlu2 %364 }
 0x26e   :  { %v369_v21 = vmul.f32 %v365_v20, %v332_v0  ;;  %v125_v20 = vpop.f32.mrf.mxu0 }
 0x270   :  { %374 = vrot.lane.b32.xlu1 %v369_v21, %s1244_s27 }
 0x276   :  { %v128_v25 = vpop.f32.mrf.mxu0 }
 0x277   :  { %v129_v27 = vadd.f32 %v1391_v19, %v128_v25 }
 0x279   :  { %v154_v28 = vmax.f32 %v129_v27, 0.0 }
 0x2da   :  { %v373_v29 = vpop.permute.xlu0 %372 }
 0x2db   :  { %378 = vst.msk [vmem:[#allocation2] sm:$0xff] %vm169_vm2, %v373_v29  ;;  %1100 = vmatmul.msk.f32.vlgmr.msrb.gmra.mxu3 %vm169_vm2, %v373_v29 }
 0x2dc   :  { %848 = vmatpush.msrb.mxu3 %v1307_v3  ;;  %v233_v3 = vadd.f32 %v1400_v26, %v232_v35 }
 0x2de   :  { %849 = vmatpush.msrb.mxu3 %v1312_v4 }
 0x2e0   :  { %850 = vmatpush.msrb.mxu3 %v1324_v7 }
 0x2e2   :  { %v375_v30 = vpop.permute.xlu1 %374  ;;  %851 = vmatpush.msrb.mxu3 %v1354_v14 }
 0x2e3   :  { %379 = vst.msk [vmem:[#allocation2 + $0x8] sm:$0xff] %vm169_vm2, %v375_v30  ;;  %1101 = vmatmul.msk.f32.gmra.mxu3 %vm169_vm2, %v375_v30 }
 0x35e   :  { %v401_v33 = vpop.f32.mrf.mxu3 }
 0x35f   :  { %v407_v34 = vadd.f32 %v401_v33, %v230_v32 }
 0x361   :  { %1161 = vtanh.f32 %v407_v34  ;;  %v1102_v14 = vmul.f32 -1.442695, %v407_v34 }
 0x366   :  { %v404_v36 = vpop.f32.mrf.mxu3 }
 0x367   :  { %v1162_v4 = vpop.eup %1161  ;;  %v408_v37 = vadd.f32 %v404_v36, %v233_v3 }
 0x368   :  { %453 = vrot.lane.b32.xlu2 %v1162_v4, %s1243_s26 }
 0x369   :  { %1163 = vtanh.f32 %v408_v37  ;;  %v1103_v43 = vmul.f32 -1.442695, %v408_v37 }
 0x36a   :  { %1165 = vpow2.f32 %v1102_v14 }
 0x36f   :  { %v1164_v7 = vpop.eup %1163 }
 0x370   :  { %455 = vrot.lane.b32.xlu0 %v1164_v7, %s1243_s26  ;;  %v1166_v38 = vpop.eup %1165 }
 0x371   :  { %v415_v39 = vadd.f32 1.0, %v1166_v38 }
 0x373   :  { %1167 = vrcp.f32 %v415_v39  ;;  %v428_v46 = vand.u32 2147483648, %v415_v39  ;;  %vm422_vm12 = vweird.f32 %v415_v39  ;;  %v426_v47 = vand.u32 2147483647, %v415_v39 }
 0x374   :  { %1169 = vpow2.f32 %v1103_v43 }
 0x375   :  { %v429_v50 = vor.u32 1.1754944e-38, %v428_v46  ;;  %vm427_vm14 = vcmp.eq.f32.partialorder %v426_v47, 8.507059e+37 }
 0x379   :  { %v1168_v40 = vpop.eup %1167 }
 0x37a   :  { %v418_v41 = vmul.f32 %v1168_v40, %v415_v39  ;;  %vm423_vm11 = vweird.f32 %v1168_v40  ;;  %v1170_v48 = vpop.eup %1169 }
 0x37b   :  { %vm424_vm13 = vmor %vm422_vm12, %vm423_vm11  ;;  %v416_v51 = vadd.f32 1.0, %v1170_v48 }
 0x37c   :  { %v419_v42 = vsub.f32 1.0, %v418_v41 }
 0x37d   :  { %1171 = vrcp.f32 %v416_v51  ;;  %v443_v60 = vand.u32 2147483648, %v416_v51  ;;  %vm437_vm0 = vweird.f32 %v416_v51  ;;  %v441_v61 = vand.u32 2147483647, %v416_v51 }
 0x37e   :  { %v420_v44 = vmul.f32 %v1168_v40, %v419_v42 }
 0x37f   :  { %v444_v63 = vor.u32 1.1754944e-38, %v443_v60  ;;  %vm442_vm4 = vcmp.eq.f32.partialorder %v441_v61, 8.507059e+37 }
 0x380   :  { %v421_v45 = vadd.f32 %v1168_v40, %v420_v44 }
 0x382   :  { %v425_v49 = vsel %vm424_vm13, %v1168_v40, %v421_v45 }
 0x383   :  { %v430_v52 = vsel %vm427_vm14, %v429_v50, %v425_v49  ;;  %v1172_v55 = vpop.eup %1171 }
 0x384   :  { %v433_v56 = vmul.f32 %v1172_v55, %v416_v51  ;;  %vm438_vm15 = vweird.f32 %v1172_v55  ;;  %v449_v8 = vmul.f32 %v430_v52, %v1416_v10  ;;  %v126_v10 = vadd.f32 %v1391_v19, %v125_v20 }
 0x385   :  { %vm439_vm3 = vmor %vm437_vm0, %vm438_vm15 }
 0x386   :  { %v434_v57 = vsub.f32 1.0, %v433_v56  ;;  %v153_v21 = vmax.f32 %v126_v10, 0.0 }
 0x388   :  { %v435_v58 = vmul.f32 %v1172_v55, %v434_v57  ;;  %1088 = vmatmul.msk.f32.gmra.mxu1 %vm169_vm2, %v153_v21 }
 0x38a   :  { %v436_v59 = vadd.f32 %v1172_v55, %v435_v58 }
 0x38c   :  { %v440_v62 = vsel %vm439_vm3, %v1172_v55, %v436_v59 }
 0x38d   :  { %v445_v1 = vsel %vm442_vm4, %v444_v63, %v440_v62 }
 0x38e   :  { %v450_v12 = vmul.f32 %v445_v1, %v1419_v15 }
 0x390   :  { %1089 = vmatmul.msk.f32.gmra.mxu1 %vm169_vm2, %v154_v28 }
 0x3c2   :  { %v454_v53 = vpop.permute.xlu2 %453 }
 0x3c3   :  { %v459_v54 = vmul.f32 %v454_v53, %v430_v52 }
 0x3c5   :  { %463 = vrot.lane.b32.xlu1 %v459_v54, %s1244_s27 }
 0x3e2   :  { %v456_v0 = vpop.permute.xlu0 %455 }
 0x3e3   :  { %v460_v2 = vmul.f32 %v456_v0, %v445_v1 }
 0x3e5   :  { %465 = vrot.lane.b32.xlu2 %v460_v2, %s1244_s27 }
 0x405   :  { %v235_v31 = vpop.f32.mrf.mxu1 }
 0x406   :  { %v236_v32 = vadd.f32 %v1400_v26, %v235_v31 }
 0x40d   :  { %v238_v3 = vpop.f32.mrf.mxu1 }
 0x40e   :  { %v239_v36 = vadd.f32 %v1400_v26, %v238_v3 }
 0x437   :  { %v464_v9 = vpop.permute.xlu1 %463 }
 0x438   :  { %v1453_v11 = vadd.f32 %v464_v9, %v449_v8 }
 0x43a   :  { %1173 = vtanh.f32 %v1453_v11 }
 0x43f   :  { %v466_v13 = vpop.permute.xlu2 %465 }
 0x440   :  { %v1174_v16 = vpop.eup %1173  ;;  %v1457_v17 = vadd.f32 %v466_v13, %v450_v12 }
 0x441   :  { %475 = vrot.lane.b32.xlu0 %v1174_v16, %s1243_s26 }
 0x442   :  { %1175 = vtanh.f32 %v1457_v17 }
 0x448   :  { %v1176_v18 = vpop.eup %1175 }
 0x449   :  { %477 = vrot.lane.b32.xlu1 %v1176_v18, %s1243_s26 }
 0x4b3   :  { %v476_v22 = vpop.permute.xlu0 %475 }
 0x4b4   :  { %v481_v23 = vmul.f32 %v476_v22, %v430_v52  ;;  %v131_v22 = vpop.f32.mrf.mxu0 }
 0x4b6   :  { %485 = vrot.lane.b32.xlu2 %v481_v23, %s1244_s27  ;;  %v132_v23 = vadd.f32 %v1391_v19, %v131_v22 }
 0x4bb   :  { %v478_v15 = vpop.permute.xlu1 %477 }
 0x4bc   :  { %v482_v24 = vmul.f32 %v478_v15, %v445_v1  ;;  %v155_v15 = vmax.f32 %v132_v23, 0.0  ;;  %v134_v25 = vpop.f32.mrf.mxu0 }
 0x4bd   :  { %v135_v27 = vadd.f32 %v1391_v19, %v134_v25 }
 0x4be   :  { %487 = vrot.lane.b32.xlu0 %v482_v24, %s1244_s27  ;;  %1090 = vmatmul.msk.f32.gmra.mxu1 %vm169_vm2, %v155_v15 }
 0x4bf   :  { %v156_v28 = vmax.f32 %v135_v27, 0.0 }
 0x4c6   :  { %1091 = vmatmul.msk.f32.gmra.mxu1 %vm169_vm2, %v156_v28 }
 0x510   :  { %v486_v29 = vpop.permute.xlu2 %485 }
 0x511   :  { %491 = vst.msk [vmem:[#allocation2 + $0x10] sm:$0xff] %vm169_vm2, %v486_v29  ;;  %1104 = vmatmul.msk.f32.vlgmr.msrb.gmra.mxu2 %vm169_vm2, %v486_v29 }
 0x530   :  { %v488_v30 = vpop.permute.xlu0 %487 }
 0x531   :  { %492 = vst.msk [vmem:[#allocation2 + $0x18] sm:$0xff] %vm169_vm2, %v488_v30  ;;  %1105 = vmatmul.msk.f32.gmra.mxu2 %vm169_vm2, %v488_v30 }
 0x53b   :  { %v241_v31 = vpop.f32.mrf.mxu1 }
 0x594   :  { %v514_v33 = vpop.f32.mrf.mxu2 }
 0x595   :  { %v520_v34 = vadd.f32 %v514_v33, %v236_v32  ;;  %v242_v32 = vadd.f32 %v1400_v26, %v241_v31  ;;  %v958_v31 = vld [vmem:[%s1686_s6 + $0x8] sm:$0xff] }
 0x597   :  { %1177 = vtanh.f32 %v520_v34  ;;  %v1106_v14 = vmul.f32 -1.442695, %v520_v34 }
 0x59d   :  { %v1178_v35 = vpop.eup %1177 }
 0x59e   :  { %566 = vrot.lane.b32.xlu1 %v1178_v35, %s1243_s26  ;;  %v244_v35 = vpop.f32.mrf.mxu1 }
 0x59f   :  { %v245_v3 = vadd.f32 %v1400_v26, %v244_v35  ;;  %v946_v35 = vld [vmem:[#allocation2 + $0x8] sm:$0xff] }
 0x5b4   :  { %v517_v4 = vpop.f32.mrf.mxu2 }
 0x5b5   :  { %v521_v37 = vadd.f32 %v517_v4, %v239_v36 }
 0x5b7   :  { %1179 = vtanh.f32 %v521_v37  ;;  %v1107_v38 = vmul.f32 -1.442695, %v521_v37 }
 0x5b8   :  { %1181 = vpow2.f32 %v1106_v14 }
 0x5b9   :  { %1183 = vpow2.f32 %v1107_v38 }
 0x5bd   :  { %v1180_v7 = vpop.eup %1179 }
 0x5be   :  { %568 = vrot.lane.b32.xlu2 %v1180_v7, %s1243_s26  ;;  %v1182_v39 = vpop.eup %1181 }
 0x5bf   :  { %v528_v40 = vadd.f32 1.0, %v1182_v39  ;;  %v1184_v41 = vpop.eup %1183 }
 0x5c0   :  { %v529_v42 = vadd.f32 1.0, %v1184_v41 }
 0x5c1   :  { %1185 = vrcp.f32 %v528_v40  ;;  %v541_v51 = vand.u32 2147483648, %v528_v40  ;;  %vm535_vm6 = vweird.f32 %v528_v40  ;;  %v539_v52 = vand.u32 2147483647, %v528_v40 }
 0x5c2   :  { %1187 = vrcp.f32 %v529_v42  ;;  %v556_v60 = vand.u32 2147483648, %v529_v42  ;;  %vm550_vm10 = vweird.f32 %v529_v42  ;;  %v554_v61 = vand.u32 2147483647, %v529_v42 }
 0x5c3   :  { %v542_v55 = vor.u32 1.1754944e-38, %v541_v51  ;;  %vm540_vm8 = vcmp.eq.f32.partialorder %v539_v52, 8.507059e+37 }
 0x5c4   :  { %v557_v63 = vor.u32 1.1754944e-38, %v556_v60  ;;  %vm555_vm12 = vcmp.eq.f32.partialorder %v554_v61, 8.507059e+37 }
 0x5c7   :  { %v1186_v43 = vpop.eup %1185 }
 0x5c8   :  { %v531_v44 = vmul.f32 %v1186_v43, %v528_v40  ;;  %v1188_v46 = vpop.eup %1187  ;;  %vm536_vm5 = vweird.f32 %v1186_v43 }
 0x5c9   :  { %v546_v48 = vmul.f32 %v1188_v46, %v529_v42  ;;  %vm537_vm7 = vmor %vm535_vm6, %vm536_vm5  ;;  %vm551_vm9 = vweird.f32 %v1188_v46 }
 0x5ca   :  { %v532_v45 = vsub.f32 1.0, %v531_v44  ;;  %vm552_vm11 = vmor %vm550_vm10, %vm551_vm9 }
 0x5cb   :  { %v547_v50 = vsub.f32 1.0, %v546_v48 }
 0x5cc   :  { %v533_v47 = vmul.f32 %v1186_v43, %v532_v45 }
 0x5cd   :  { %v548_v54 = vmul.f32 %v1188_v46, %v547_v50 }
 0x5ce   :  { %v534_v49 = vadd.f32 %v1186_v43, %v533_v47 }
 0x5cf   :  { %v549_v59 = vadd.f32 %v1188_v46, %v548_v54 }
 0x5d0   :  { %v538_v53 = vsel %vm537_vm7, %v1186_v43, %v534_v49  ;;  %vm1054_vm7 = vcmask 31744  }
 0x5d1   :  { %v543_v57 = vsel %vm540_vm8, %v542_v55, %v538_v53  ;;  %v553_v62 = vsel %vm552_vm11, %v1188_v46, %v549_v59 }
 0x5d2   :  { %v558_v1 = vsel %vm555_vm12, %v557_v63, %v553_v62  ;;  %v562_v8 = vmul.f32 %v543_v57, %v1453_v11 }
 0x5d3   :  { %v563_v13 = vmul.f32 %v558_v1, %v1457_v17 }
 0x610   :  { %v567_v56 = vpop.permute.xlu1 %566 }
 0x611   :  { %v572_v58 = vmul.f32 %v567_v56, %v543_v57 }
 0x613   :  { %576 = vrot.lane.b32.xlu0 %v572_v58, %s1244_s27 }
 0x618   :  { %v569_v0 = vpop.permute.xlu2 %568 }
 0x619   :  { %v573_v2 = vmul.f32 %v569_v0, %v558_v1 }
 0x61b   :  { %578 = vrot.lane.b32.xlu1 %v573_v2, %s1244_s27 }
 0x685   :  { %v577_v9 = vpop.permute.xlu0 %576 }
 0x686   :  { %v1487_v12 = vadd.f32 %v577_v9, %v562_v8 }
 0x688   :  { %1189 = vtanh.f32 %v1487_v12 }
 0x68d   :  { %v579_v16 = vpop.permute.xlu1 %578 }
 0x68e   :  { %v1190_v18 = vpop.eup %1189  ;;  %v1491_v20 = vadd.f32 %v579_v16, %v563_v13  ;;  %v40_v13 = vld [vmem:[%s1683_s0 + $0x40] sm:$0xff]  ;;  %v41_v16 = vld [vmem:[%s1683_s0 + $0x48] sm:$0xff] }
 0x68f   :  { %588 = vrot.lane.b32.xlu2 %v1190_v18, %s1243_s26  ;;  %1080 = vmatmul.msk.f32.gmra.mxu0 %vm55_vm1, %v40_v13 }
 0x690   :  { %1191 = vtanh.f32 %v1491_v20 }
 0x696   :  { %v1192_v10 = vpop.eup %1191 }
 0x697   :  { %590 = vrot.lane.b32.xlu0 %v1192_v10, %s1243_s26  ;;  %1081 = vmatmul.msk.f32.gmra.mxu0 %vm55_vm1, %v41_v16 }
 0x6e9   :  { %v589_v21 = vpop.permute.xlu2 %588 }
 0x6ea   :  { %v594_v11 = vmul.f32 %v589_v21, %v543_v57 }
 0x6ec   :  { %598 = vrot.lane.b32.xlu1 %v594_v11, %s1244_s27 }
 0x709   :  { %v591_v17 = vpop.permute.xlu0 %590 }
 0x70a   :  { %v595_v24 = vmul.f32 %v591_v17, %v558_v1 }
 0x70c   :  { %600 = vrot.lane.b32.xlu2 %v595_v24, %s1244_s27  ;;  %v137_v17 = vpop.f32.mrf.mxu0 }
 0x70d   :  { %v138_v24 = vadd.f32 %v1391_v19, %v137_v17 }
 0x714   :  { %v140_v25 = vpop.f32.mrf.mxu0 }
 0x715   :  { %v141_v27 = vadd.f32 %v1391_v19, %v140_v25  ;;  %v957_v19 = vld [vmem:[%s1686_s6] sm:$0xff] }
 0x717   :  { %v158_v28 = vmax.f32 %v141_v27, 0.0 }
 0x75e   :  { %v599_v29 = vpop.permute.xlu1 %598 }
 0x75f   :  { %604 = vst.msk [vmem:[#allocation2 + $0x20] sm:$0xff] %vm169_vm2, %v599_v29  ;;  %1108 = vmatmul.msk.f32.vlgmr.msra.gmra.mxu3 %vm169_vm2, %v599_v29  ;;  %v960_v29 = vld [vmem:[%s1686_s6 + $0x18] sm:$0xff] }
 0x760   :  { %1013 = vmatpush.msrb.mxu2 %v960_v29  ;;  %1136 = vmatpush.msra.mxu3 %v960_v29 }
 0x766   :  { %v601_v30 = vpop.permute.xlu2 %600 }
 0x767   :  { %605 = vst.msk [vmem:[#allocation2 + $0x28] sm:$0xff] %vm169_vm2, %v601_v30  ;;  %1109 = vmatmul.msk.f32.gmra.mxu3 %vm169_vm2, %v601_v30  ;;  %v959_v30 = vld [vmem:[%s1686_s6 + $0x10] sm:$0xff] }
 0x768   :  { %1014 = vmatpush.msrb.mxu2 %v959_v30  ;;  %1137 = vmatpush.msra.mxu3 %v959_v30 }
 0x76a   :  { %1015 = vmatpush.msrb.mxu2 %v958_v31  ;;  %1138 = vmatpush.msra.mxu3 %v958_v31 }
 0x76c   :  { %1016 = vmatpush.msrb.mxu2 %v957_v19  ;;  %1139 = vmatpush.msra.mxu3 %v957_v19 }
 0x7e2   :  { %v627_v33 = vpop.f32.mrf.mxu3 }
 0x7e3   :  { %v633_v34 = vadd.f32 %v627_v33, %v242_v32 }
 0x7e5   :  { %1193 = vtanh.f32 %v633_v34  ;;  %v1110_v14 = vmul.f32 -1.442695, %v633_v34  ;;  %v945_v34 = vld [vmem:[#allocation2] sm:$0xff] }
 0x7ea   :  { %v630_v36 = vpop.f32.mrf.mxu3 }
 0x7eb   :  { %v1194_v4 = vpop.eup %1193  ;;  %v634_v37 = vadd.f32 %v630_v36, %v245_v3  ;;  %v947_v3 = vld [vmem:[#allocation2 + $0x10] sm:$0xff]  ;;  %v948_v36 = vld [vmem:[#allocation2 + $0x18] sm:$0xff] }
 0x7ec   :  { %679 = vrot.lane.b32.xlu0 %v1194_v4, %s1243_s26  ;;  %v949_v4 = vld [vmem:[#allocation2 + $0x20] sm:$0xff] }
 0x7ed   :  { %1195 = vtanh.f32 %v634_v37  ;;  %v1111_v38 = vmul.f32 -1.442695, %v634_v37  ;;  %v950_v37 = vld [vmem:[#allocation2 + $0x28] sm:$0xff] }
 0x7ee   :  { %1197 = vpow2.f32 %v1110_v14 }
 0x7ef   :  { %1199 = vpow2.f32 %v1111_v38 }
 0x7f3   :  { %v1196_v7 = vpop.eup %1195 }
 0x7f4   :  { %681 = vrot.lane.b32.xlu1 %v1196_v7, %s1243_s26  ;;  %v1198_v39 = vpop.eup %1197 }
 0x7f5   :  { %v641_v40 = vadd.f32 1.0, %v1198_v39  ;;  %v1200_v41 = vpop.eup %1199 }
 0x7f6   :  { %v642_v42 = vadd.f32 1.0, %v1200_v41 }
 0x7f7   :  { %1201 = vrcp.f32 %v641_v40  ;;  %v654_v51 = vand.u32 2147483648, %v641_v40  ;;  %vm648_vm14 = vweird.f32 %v641_v40  ;;  %v652_v52 = vand.u32 2147483647, %v641_v40 }
 0x7f8   :  { %1203 = vrcp.f32 %v642_v42  ;;  %v669_v60 = vand.u32 2147483648, %v642_v42  ;;  %vm663_vm4 = vweird.f32 %v642_v42  ;;  %v667_v61 = vand.u32 2147483647, %v642_v42 }
 0x7f9   :  { %v655_v55 = vor.u32 1.1754944e-38, %v654_v51  ;;  %vm653_vm0 = vcmp.eq.f32.partialorder %v652_v52, 8.507059e+37 }
 0x7fa   :  { %v670_v63 = vor.u32 1.1754944e-38, %v669_v60  ;;  %vm668_vm6 = vcmp.eq.f32.partialorder %v667_v61, 8.507059e+37 }
 0x7fd   :  { %v1202_v43 = vpop.eup %1201 }
 0x7fe   :  { %v644_v44 = vmul.f32 %v1202_v43, %v641_v40  ;;  %v1204_v46 = vpop.eup %1203  ;;  %vm649_vm13 = vweird.f32 %v1202_v43 }
 0x7ff   :  { %v659_v48 = vmul.f32 %v1204_v46, %v642_v42  ;;  %vm650_vm15 = vmor %vm648_vm14, %vm649_vm13  ;;  %vm664_vm3 = vweird.f32 %v1204_v46 }
 0x800   :  { %v645_v45 = vsub.f32 1.0, %v644_v44  ;;  %vm665_vm5 = vmor %vm663_vm4, %vm664_vm3 }
 0x801   :  { %v660_v50 = vsub.f32 1.0, %v659_v48 }
 0x802   :  { %v646_v47 = vmul.f32 %v1202_v43, %v645_v45 }
 0x803   :  { %v661_v54 = vmul.f32 %v1204_v46, %v660_v50 }
 0x804   :  { %v647_v49 = vadd.f32 %v1202_v43, %v646_v47 }
 0x805   :  { %v662_v59 = vadd.f32 %v1204_v46, %v661_v54 }
 0x806   :  { %v651_v53 = vsel %vm650_vm15, %v1202_v43, %v647_v49 }
 0x807   :  { %v656_v56 = vsel %vm653_vm0, %v655_v55, %v651_v53  ;;  %v666_v62 = vsel %vm665_vm5, %v1204_v46, %v662_v59  ;;  %v1565_v46 = vld [vmem:[%s1687_s7] ss:$0 sm:$0xff] }
 0x808   :  { %v671_v1 = vsel %vm668_vm6, %v670_v63, %v666_v62  ;;  %v675_v5 = vmul.f32 %v656_v56, %v1487_v12 }
 0x809   :  { %v676_v12 = vmul.f32 %v671_v1, %v1491_v20  ;;  %v157_v20 = vmax.f32 %v138_v24, 0.0 }
 0x80b   :  { %1092 = vmatmul.msk.f32.gmra.mxu1 %vm169_vm2, %v157_v20 }
 0x813   :  { %1093 = vmatmul.msk.f32.gmra.mxu1 %vm169_vm2, %v158_v28 }
 0x85e   :  { %v680_v57 = vpop.permute.xlu0 %679 }
 0x85f   :  { %v685_v58 = vmul.f32 %v680_v57, %v656_v56 }
 0x861   :  { %689 = vrot.lane.b32.xlu2 %v685_v58, %s1244_s27 }
 0x866   :  { %v682_v0 = vpop.permute.xlu1 %681 }
 0x867   :  { %v686_v2 = vmul.f32 %v682_v0, %v671_v1 }
 0x869   :  { %691 = vrot.lane.b32.xlu0 %v686_v2, %s1244_s27 }
 0x888   :  { %v247_v14 = vpop.f32.mrf.mxu1 }
 0x889   :  { %v248_v38 = vadd.f32 %v1400_v26, %v247_v14 }
 0x890   :  { %v250_v41 = vpop.f32.mrf.mxu1 }
 0x891   :  { %v251_v42 = vadd.f32 %v1400_v26, %v250_v41 }
 0x8bb   :  { %v690_v6 = vpop.permute.xlu2 %689 }
 0x8bc   :  { %v1513_v8 = vadd.f32 %v690_v6, %v675_v5 }
 0x8be   :  { %1205 = vtanh.f32 %v1513_v8 }
 0x8c4   :  { %v1206_v9 = vpop.eup %1205 }
 0x8c5   :  { %701 = vrot.lane.b32.xlu1 %v1206_v9, %s1243_s26 }
 0x8db   :  { %v692_v18 = vpop.permute.xlu0 %691 }
 0x8dc   :  { %v1526_v10 = vadd.f32 %v692_v18, %v676_v12 }
 0x8de   :  { %1207 = vtanh.f32 %v1526_v10 }
 0x8e4   :  { %v1208_v21 = vpop.eup %1207 }
 0x8e5   :  { %703 = vrot.lane.b32.xlu2 %v1208_v21, %s1243_s26 }
 0x937   :  { %v702_v11 = vpop.permute.xlu1 %701 }
 0x938   :  { %v707_v22 = vmul.f32 %v702_v11, %v656_v56 }
 0x93a   :  { %711 = vrot.lane.b32.xlu0 %v707_v22, %s1244_s27 }
 0x93f   :  { %v704_v23 = vpop.permute.xlu2 %703 }
 0x940   :  { %v708_v15 = vmul.f32 %v704_v23, %v671_v1 }
 0x942   :  { %713 = vrot.lane.b32.xlu1 %v708_v15, %s1244_s27 }
 0x9ac   :  { %v712_v32 = vpop.permute.xlu0 %711 }
 0x9ad   :  { %717 = vst.msk [vmem:[#allocation2 + $0x30] sm:$0xff] %vm169_vm2, %v712_v32  ;;  %1112 = vmatmul.msk.f32.vlgmr.msra.gmra.mxu2 %vm169_vm2, %v712_v32 }
 0x9b4   :  { %v714_v33 = vpop.permute.xlu1 %713  ;;  %v951_v7 = vld [vmem:[#allocation2 + $0x30] sm:$0xff] }
 0x9b5   :  { %718 = vst.msk [vmem:[#allocation2 + $0x38] sm:$0xff] %vm169_vm2, %v714_v33  ;;  %1113 = vmatmul.msk.f32.gmra.mxu2 %vm169_vm2, %v714_v33 }
 0x9bd   :  { %1120 = vmatmul.msk.f32.vlgmr.msrb.gmra.mxu2 %vm169_vm2, %v945_v34  ;;  %v42_v34 = vld [vmem:[%s1683_s0 + $0x50] sm:$0xff] }
 0x9be   :  { %1082 = vmatmul.msk.f32.gmra.mxu0 %vm55_vm1, %v42_v34 }
 0x9c5   :  { %1121 = vmatmul.msk.f32.gmra.mxu2 %vm169_vm2, %v946_v35  ;;  %v43_v35 = vld [vmem:[%s1683_s0 + $0x58] sm:$0xff] }
 0x9c6   :  { %1083 = vmatmul.msk.f32.gmra.mxu0 %vm55_vm1, %v43_v35 }
 0x9cd   :  { %1122 = vmatmul.msk.f32.gmra.mxu2 %vm169_vm2, %v947_v3 }
 0x9d5   :  { %1123 = vmatmul.msk.f32.gmra.mxu2 %vm169_vm2, %v948_v36 }
 0x9dd   :  { %1124 = vmatmul.msk.f32.gmra.mxu2 %vm169_vm2, %v949_v4 }
 0x9e5   :  { %1125 = vmatmul.msk.f32.gmra.mxu2 %vm169_vm2, %v950_v37 }
 0x9ed   :  { %1126 = vmatmul.msk.f32.gmra.mxu2 %vm169_vm2, %v951_v7 }
 0xa30   :  { %v740_v39 = vpop.f32.mrf.mxu2 }
 0xa31   :  { %v746_v40 = vadd.f32 %v740_v39, %v248_v38 }
 0xa33   :  { %1209 = vtanh.f32 %v746_v40  ;;  %v1114_v57 = vmul.f32 -1.442695, %v746_v40 }
 0xa38   :  { %v743_v43 = vpop.f32.mrf.mxu2 }
 0xa39   :  { %v1210_v44 = vpop.eup %1209  ;;  %v747_v45 = vadd.f32 %v743_v43, %v251_v42 }
 0xa3a   :  { %792 = vrot.lane.b32.xlu2 %v1210_v44, %s1243_s26 }
 0xa3b   :  { %1211 = vtanh.f32 %v747_v45  ;;  %v1115_v5 = vmul.f32 -1.442695, %v747_v45  ;;  %v143_v40 = vpop.f32.mrf.mxu0 }
 0xa3c   :  { %1213 = vpow2.f32 %v1114_v57 }
 0xa40   :  { %v1018_v47 = vpop.f32.mrf.mxu2 }
 0xa41   :  { %v1212_v48 = vpop.eup %1211  ;;  %v1019_v49 = vadd.f32 %v1565_v46, %v1018_v47 }
 0xa42   :  { %794 = vrot.lane.b32.xlu0 %v1212_v48, %s1243_s26  ;;  %v1214_v61 = vpop.eup %1213 }
 0xa43   :  { %1055 = vst.msk [vmem:[%s1688_s9] sm:$0xff] %vm1054_vm7, %v1019_v49  ;;  %v754_v63 = vadd.f32 1.0, %v1214_v61  ;;  %v146_v47 = vpop.f32.mrf.mxu0 }
 0xa45   :  { %1215 = vrcp.f32 %v754_v63  ;;  %v767_v13 = vand.u32 2147483648, %v754_v63  ;;  %vm761_vm9 = vweird.f32 %v754_v63  ;;  %v765_v16 = vand.u32 2147483647, %v754_v63 }
 0xa46   :  { %1217 = vpow2.f32 %v1115_v5 }
 0xa47   :  { %v768_v21 = vor.u32 1.1754944e-38, %v767_v13  ;;  %vm766_vm11 = vcmp.eq.f32.partialorder %v765_v16, 8.507059e+37 }
 0xa48   :  { %v1021_v26 = vpop.f32.mrf.mxu2 }
 0xa49   :  { %v1022_v50 = vadd.f32 %v1565_v46, %v1021_v26 }
 0xa4b   :  { %1056 = vst.msk [vmem:[%s1688_s9 + $0x8] sm:$0xff] %vm1054_vm7, %v1022_v50  ;;  %v1216_v0 = vpop.eup %1215 }
 0xa4c   :  { %v757_v1 = vmul.f32 %v1216_v0, %v754_v63  ;;  %vm762_vm8 = vweird.f32 %v1216_v0  ;;  %v1218_v12 = vpop.eup %1217 }
 0xa4d   :  { %vm763_vm10 = vmor %vm761_vm9, %vm762_vm8  ;;  %v755_v11 = vadd.f32 1.0, %v1218_v12 }
 0xa4e   :  { %v758_v2 = vsub.f32 1.0, %v757_v1 }
 0xa4f   :  { %1219 = vrcp.f32 %v755_v11  ;;  %v782_v28 = vand.u32 2147483648, %v755_v11  ;;  %vm776_vm13 = vweird.f32 %v755_v11  ;;  %v780_v29 = vand.u32 2147483647, %v755_v11 }
 0xa50   :  { %v1024_v51 = vpop.f32.mrf.mxu2  ;;  %v759_v6 = vmul.f32 %v1216_v0, %v758_v2 }
 0xa51   :  { %v1025_v52 = vadd.f32 %v1565_v46, %v1024_v51  ;;  %v783_v31 = vor.u32 1.1754944e-38, %v782_v28  ;;  %vm781_vm15 = vcmp.eq.f32.partialorder %v780_v29, 8.507059e+37  ;;  %v952_v51 = vld [vmem:[#allocation2 + $0x38] sm:$0xff] }
 0xa52   :  { %v760_v9 = vadd.f32 %v1216_v0, %v759_v6 }
 0xa53   :  { %1057 = vst.msk [vmem:[%s1688_s9 + $0x10] sm:$0xff] %vm1054_vm7, %v1025_v52 }
 0xa54   :  { %v764_v18 = vsel %vm763_vm10, %v1216_v0, %v760_v9 }
 0xa55   :  { %v769_v23 = vsel %vm766_vm11, %v768_v21, %v764_v18  ;;  %v1220_v17 = vpop.eup %1219 }
 0xa56   :  { %v772_v24 = vmul.f32 %v1220_v17, %v755_v11  ;;  %vm777_vm12 = vweird.f32 %v1220_v17  ;;  %v788_v3 = vmul.f32 %v769_v23, %v1513_v8  ;;  %v1241_v8 = vld [vmem:[%s1682_s2] ss:$0 sm:$0xff] }
 0xa57   :  { %vm778_vm14 = vmor %vm776_vm13, %vm777_vm12  ;;  %v144_v41 = vadd.f32 %v1241_v8, %v143_v40  ;;  %v147_v48 = vadd.f32 %v1241_v8, %v146_v47 }
 0xa58   :  { %v1027_v53 = vpop.f32.mrf.mxu2  ;;  %v773_v20 = vsub.f32 1.0, %v772_v24 }
 0xa59   :  { %v1028_v54 = vadd.f32 %v1565_v46, %v1027_v53  ;;  %v159_v42 = vmax.f32 %v144_v41, 0.0  ;;  %v160_v49 = vmax.f32 %v147_v48, 0.0 }
 0xa5a   :  { %v774_v25 = vmul.f32 %v1220_v17, %v773_v20 }
 0xa5b   :  { %1058 = vst.msk [vmem:[%s1688_s9 + $0x18] sm:$0xff] %vm1054_vm7, %v1028_v54  ;;  %1094 = vmatmul.msk.f32.gmra.mxu1 %vm169_vm2, %v159_v42 }
 0xa5c   :  { %v775_v27 = vadd.f32 %v1220_v17, %v774_v25 }
 0xa5e   :  { %v779_v30 = vsel %vm778_vm14, %v1220_v17, %v775_v27 }
 0xa5f   :  { %v784_v32 = vsel %vm781_vm15, %v783_v31, %v779_v30 }
 0xa60   :  { %v1030_v55 = vpop.f32.mrf.mxu2  ;;  %v789_v37 = vmul.f32 %v784_v32, %v1526_v10 }
 0xa61   :  { %v1031_v56 = vadd.f32 %v1565_v46, %v1030_v55  ;;  %v1242_v55 = vld [vmem:[%s1684_s5] ss:$0 sm:$0xff] }
 0xa63   :  { %1059 = vst.msk [vmem:[%s1688_s9 + $0x20] sm:$0xff] %vm1054_vm7, %v1031_v56  ;;  %1095 = vmatmul.msk.f32.gmra.mxu1 %vm169_vm2, %v160_v49 }
 0xa68   :  { %v1033_v58 = vpop.f32.mrf.mxu2 }
 0xa69   :  { %v1034_v59 = vadd.f32 %v1565_v46, %v1033_v58 }
 0xa6b   :  { %1060 = vst.msk [vmem:[%s1688_s9 + $0x28] sm:$0xff] %vm1054_vm7, %v1034_v59 }
 0xa70   :  { %v1036_v60 = vpop.f32.mrf.mxu2 }
 0xa71   :  { %v1037_v62 = vadd.f32 %v1565_v46, %v1036_v60 }
 0xa73   :  { %1061 = vst.msk [vmem:[%s1688_s9 + $0x30] sm:$0xff] %vm1054_vm7, %v1037_v62 }
 0xa94   :  { %v793_v22 = vpop.permute.xlu2 %792 }
 0xa95   :  { %v798_v15 = vmul.f32 %v793_v22, %v769_v23 }
 0xa97   :  { %802 = vrot.lane.b32.xlu1 %v798_v15, %s1244_s27 }
 0xab4   :  { %v795_v19 = vpop.permute.xlu0 %794 }
 0xab5   :  { %v799_v33 = vmul.f32 %v795_v19, %v784_v32 }
 0xab7   :  { %804 = vrot.lane.b32.xlu2 %v799_v33, %s1244_s27 }
 0xad8   :  { %v253_v54 = vpop.f32.mrf.mxu1 }
 0xad9   :  { %v254_v56 = vadd.f32 %v1242_v55, %v253_v54 }
 0xae0   :  { %v256_v60 = vpop.f32.mrf.mxu1 }
 0xae1   :  { %v257_v61 = vadd.f32 %v1242_v55, %v256_v60 }
 0xb09   :  { %v803_v36 = vpop.permute.xlu1 %802 }
 0xb0a   :  { %v1614_v4 = vadd.f32 %v803_v36, %v788_v3 }
 0xb0c   :  { %1221 = vtanh.f32 %v1614_v4 }
 0xb11   :  { %v805_v7 = vpop.permute.xlu2 %804 }
 0xb12   :  { %v1222_v14 = vpop.eup %1221  ;;  %v1618_v38 = vadd.f32 %v805_v7, %v789_v37 }
 0xb13   :  { %814 = vrot.lane.b32.xlu0 %v1222_v14, %s1243_s26 }
 0xb14   :  { %1223 = vtanh.f32 %v1618_v38 }
 0xb1a   :  { %v1224_v39 = vpop.eup %1223 }
 0xb1b   :  { %816 = vrot.lane.b32.xlu1 %v1224_v39, %s1243_s26 }
 0xb85   :  { %v815_v10 = vpop.permute.xlu0 %814 }
 0xb86   :  { %v820_v43 = vmul.f32 %v815_v10, %v769_v23 }
 0xb88   :  { %824 = vrot.lane.b32.xlu2 %v820_v43, %s1244_s27 }
 0xb8d   :  { %v817_v44 = vpop.permute.xlu1 %816 }
 0xb8e   :  { %v821_v45 = vmul.f32 %v817_v44, %v784_v32 }
 0xb90   :  { %826 = vrot.lane.b32.xlu0 %v821_v45, %s1244_s27 }
 0xbe2   :  { %v825_v26 = vpop.permute.xlu2 %824 }
 0xbe3   :  { %830 = vst.msk [vmem:[#allocation2 + $0x40] sm:$0xff] %vm169_vm2, %v825_v26  ;;  %1116 = vmatmul.msk.f32.vlgmr.msrb.gmra.mxu3 %vm169_vm2, %v825_v26 }
 0xbea   :  { %v953_v52 = vld [vmem:[#allocation2 + $0x40] sm:$0xff] }
 0xc02   :  { %v827_v50 = vpop.permute.xlu0 %826 }
 0xc03   :  { %831 = vst.msk [vmem:[#allocation2 + $0x48] sm:$0xff] %vm169_vm2, %v827_v50  ;;  %1117 = vmatmul.msk.f32.gmra.mxu3 %vm169_vm2, %v827_v50 }
 0xc0a   :  { %v954_v53 = vld [vmem:[#allocation2 + $0x48] sm:$0xff] }
 0xc0b   :  { %1127 = vmatmul.msk.f32.vlgmr.msra.gmra.mxu3 %vm169_vm2, %v952_v51 }
 0xc13   :  { %1128 = vmatmul.msk.f32.gmra.mxu3 %vm169_vm2, %v953_v52 }
 0xc1b   :  { %1129 = vmatmul.msk.f32.gmra.mxu3 %vm169_vm2, %v954_v53 }
 0xc66   :  { %v853_v57 = vpop.f32.mrf.mxu3 }
 0xc67   :  { %v859_v58 = vadd.f32 %v853_v57, %v254_v56 }
 0xc69   :  { %1225 = vtanh.f32 %v859_v58  ;;  %v1118_v16 = vmul.f32 -1.442695, %v859_v58 }
 0xc6f   :  { %v1226_v59 = vpop.eup %1225 }
 0xc70   :  { %905 = vrot.lane.b32.xlu1 %v1226_v59, %s1243_s26 }
 0xc86   :  { %v856_v62 = vpop.f32.mrf.mxu3 }
 0xc87   :  { %v860_v63 = vadd.f32 %v856_v62, %v257_v61 }
 0xc89   :  { %1227 = vtanh.f32 %v860_v63  ;;  %v1119_v12 = vmul.f32 -1.442695, %v860_v63 }
 0xc8a   :  { %1229 = vpow2.f32 %v1118_v16 }
 0xc8b   :  { %1231 = vpow2.f32 %v1119_v12 }
 0xc8e   :  { %v1039_v0 = vpop.f32.mrf.mxu3 }
 0xc8f   :  { %v1228_v1 = vpop.eup %1227  ;;  %v1040_v2 = vadd.f32 %v1565_v46, %v1039_v0 }
 0xc90   :  { %907 = vrot.lane.b32.xlu2 %v1228_v1, %s1243_s26  ;;  %v1230_v18 = vpop.eup %1229 }
 0xc91   :  { %1062 = vst.msk [vmem:[%s1688_s9 + $0x38] sm:$0xff] %vm1054_vm7, %v1040_v2  ;;  %v867_v21 = vadd.f32 1.0, %v1230_v18  ;;  %v1232_v11 = vpop.eup %1231 }
 0xc92   :  { %v868_v22 = vadd.f32 1.0, %v1232_v11 }
 0xc93   :  { %1233 = vrcp.f32 %v867_v21  ;;  %v880_v29 = vand.u32 2147483648, %v867_v21  ;;  %vm874_vm0 = vweird.f32 %v867_v21  ;;  %v878_v30 = vand.u32 2147483647, %v867_v21 }
 0xc94   :  { %1235 = vrcp.f32 %v868_v22  ;;  %v895_v36 = vand.u32 2147483648, %v868_v22  ;;  %vm889_vm6 = vweird.f32 %v868_v22  ;;  %v893_v37 = vand.u32 2147483647, %v868_v22 }
 0xc95   :  { %v881_v32 = vor.u32 1.1754944e-38, %v880_v29  ;;  %vm879_vm4 = vcmp.eq.f32.partialorder %v878_v30, 8.507059e+37 }
 0xc96   :  { %v1042_v5 = vpop.f32.mrf.mxu3  ;;  %v896_v14 = vor.u32 1.1754944e-38, %v895_v36  ;;  %vm894_vm9 = vcmp.eq.f32.partialorder %v893_v37, 8.507059e+37 }
 0xc97   :  { %v1043_v6 = vadd.f32 %v1565_v46, %v1042_v5 }
 0xc99   :  { %1063 = vst.msk [vmem:[%s1688_s9 + $0x40] sm:$0xff] %vm1054_vm7, %v1043_v6  ;;  %v1234_v23 = vpop.eup %1233 }
 0xc9a   :  { %v870_v15 = vmul.f32 %v1234_v23, %v867_v21  ;;  %v1236_v24 = vpop.eup %1235  ;;  %vm875_vm1 = vweird.f32 %v1234_v23 }
 0xc9b   :  { %v885_v25 = vmul.f32 %v1236_v24, %v868_v22  ;;  %vm876_vm3 = vmor %vm874_vm0, %vm875_vm1  ;;  %vm890_vm5 = vweird.f32 %v1236_v24 }
 0xc9c   :  { %v871_v17 = vsub.f32 1.0, %v870_v15  ;;  %vm891_vm8 = vmor %vm889_vm6, %vm890_vm5 }
 0xc9d   :  { %v886_v28 = vsub.f32 1.0, %v885_v25 }
 0xc9e   :  { %v1045_v9 = vpop.f32.mrf.mxu3  ;;  %v872_v20 = vmul.f32 %v1234_v23, %v871_v17 }
 0xc9f   :  { %v1046_v13 = vadd.f32 %v1565_v46, %v1045_v9  ;;  %v887_v19 = vmul.f32 %v1236_v24, %v886_v28 }
 0xca0   :  { %v873_v27 = vadd.f32 %v1234_v23, %v872_v20 }
 0xca1   :  { %1064 = vst.msk [vmem:[%s1688_s9 + $0x48] sm:$0xff] %vm1054_vm7, %v1046_v13  ;;  %v888_v3 = vadd.f32 %v1236_v24, %v887_v19 }
 0xca2   :  { %v877_v31 = vsel %vm876_vm3, %v1234_v23, %v873_v27 }
 0xca3   :  { %v882_v33 = vsel %vm879_vm4, %v881_v32, %v877_v31  ;;  %v892_v7 = vsel %vm891_vm8, %v1236_v24, %v888_v3 }
 0xca4   :  { %v897_v40 = vsel %vm894_vm9, %v896_v14, %v892_v7  ;;  %v901_v41 = vmul.f32 %v882_v33, %v1614_v4 }
 0xca5   :  { %v902_v43 = vmul.f32 %v897_v40, %v1618_v38 }
 0xce2   :  { %v906_v34 = vpop.permute.xlu1 %905 }
 0xce3   :  { %v911_v35 = vmul.f32 %v906_v34, %v882_v33 }
 0xce5   :  { %915 = vrot.lane.b32.xlu0 %v911_v35, %s1244_s27 }
 0xcea   :  { %v908_v39 = vpop.permute.xlu2 %907 }
 0xceb   :  { %v912_v8 = vmul.f32 %v908_v39, %v897_v40 }
 0xced   :  { %917 = vrot.lane.b32.xlu1 %v912_v8, %s1244_s27 }
 0xd57   :  { %v916_v42 = vpop.permute.xlu0 %915 }
 0xd58   :  { %v921_v10 = vadd.f32 %v916_v42, %v901_v41 }
 0xd5a   :  { %1237 = vtanh.f32 %v921_v10 }
 0xd5f   :  { %v918_v44 = vpop.permute.xlu1 %917 }
 0xd60   :  { %v1238_v45 = vpop.eup %1237  ;;  %v922_v47 = vadd.f32 %v918_v44, %v902_v43 }
 0xd61   :  { %927 = vrot.lane.b32.xlu2 %v1238_v45, %s1243_s26 }
 0xd62   :  { %1239 = vtanh.f32 %v922_v47 }
 0xd68   :  { %v1240_v48 = vpop.eup %1239 }
 0xd69   :  { %929 = vrot.lane.b32.xlu0 %v1240_v48, %s1243_s26 }
 0xdbb   :  { %v928_v49 = vpop.permute.xlu2 %927 }
 0xdbc   :  { %v933_v26 = vmul.f32 %v928_v49, %v882_v33 }
 0xdbe   :  { %937 = vrot.lane.b32.xlu1 %v933_v26, %s1244_s27 }
 0xddb   :  { %v930_v50 = vpop.permute.xlu0 %929 }
 0xddc   :  { %v934_v4 = vmul.f32 %v930_v50, %v897_v40 }
 0xdde   :  { %939 = vrot.lane.b32.xlu2 %v934_v4, %s1244_s27 }
 0xe30   :  { %v938_v51 = vpop.permute.xlu1 %937 }
 0xe31   :  { %943 = vst.msk [vmem:[#allocation2 + $0x50] sm:$0xff] %vm169_vm2, %v938_v51 }
 0xe38   :  { %v940_v38 = vpop.permute.xlu2 %939  ;;  %v955_v52 = vld [vmem:[#allocation2 + $0x50] sm:$0xff] }
 0xe39   :  { %944 = vst.msk [vmem:[#allocation2 + $0x58] sm:$0xff] %vm169_vm2, %v940_v38  ;;  %1130 = vmatmul.msk.f32.gmra.mxu3 %vm169_vm2, %v955_v52 }
 0xe40   :  { %v956_v53 = vld [vmem:[#allocation2 + $0x58] sm:$0xff] }
 0xe41   :  { %1131 = vmatmul.msk.f32.gmra.mxu3 %vm169_vm2, %v956_v53 }
 0xebc   :  { %v1048_v54 = vpop.f32.mrf.mxu3 }
 0xebd   :  { %v1049_v55 = vadd.f32 %v1565_v46, %v1048_v54 }
 0xebf   :  { %1065 = vst.msk [vmem:[%s1688_s9 + $0x50] sm:$0xff] %vm1054_vm7, %v1049_v55 }
 0xec4   :  { %v1051_v56 = vpop.f32.mrf.mxu3 }
 0xec5   :  { %v1052_v57 = vadd.f32 %v1565_v46, %v1051_v56 }
 0xec7   :  { %1066 = vst.msk [vmem:[%s1688_s9 + $0x58] sm:$0xff] %vm1054_vm7, %v1052_v57 }

</bundles_post_ra>
